<compile_context>
chip_gen: v6e
topology: v6e:2x2x1
jax: 0.10.0
libtpu: 0.0.40
codegen_flags: <defaults>
</compile_context>

<pallas_src>
import functools

import jax
import jax.numpy as jnp
from jax import lax
from jax.experimental import pallas as pl
from jax.experimental.pallas import tpu as pltpu


# ---------------------------------------------------------------------------
# Pallas kernel: fused 3x3 conv (9 shifted matmuls) + bias + ReLU + global GAP
# ---------------------------------------------------------------------------
def conv_relu_gap_kernel(xp_ref, w_ref, b_ref, o_ref, acc_ref, *,
                         spt, W, RC, K, n_chunks, inv_p):
    """One grid step = one tile of `spt` whole samples.

    xp_ref : (spt, H+2p, W+2p, C)  zero-padded NHWC input tile, bfloat16
    w_ref  : (K*K, C, Cout)        per-tap conv weights, bfloat16
    b_ref  : (1, Cout)             bias, float32
    o_ref  : (1, spt, Cout)        pooled features for this tile, float32
    acc_ref: (spt, Cout)           f32 VMEM accumulator (per-sample pooled sums)
    """
    C = xp_ref.shape[-1]
    Cout = w_ref.shape[-1]

    # Loop-invariant loads hoisted out of the chunk loop.
    wv = w_ref[...]                       # (K*K, C, Cout) bf16
    bv = b_ref[...]                       # (1, Cout) f32

    acc_ref[...] = jnp.zeros_like(acc_ref)

    def chunk_body(r, carry):
        # Output rows [h0, h0 + RC) of every sample in this tile.
        h0 = pl.multiple_of(r * RC, RC)
        # One band load per chunk: input rows [h0, h0 + RC + K - 1).
        # Stage the band in f32 so the 9 shifted slices / collapses below are
        # plain unpacked-layout ops (odd sublane offsets on packed bf16 are the
        # only layout-fragile step); the band is only a few KiB of vregs.
        band = xp_ref[:, pl.ds(h0, RC + K - 1), :, :].astype(jnp.float32)

        acts = jnp.zeros((spt * RC * W, Cout), jnp.float32)
        for dh in range(K):
            for dw in range(K):
                a = band[:, dh:dh + RC, dw:dw + W, :]          # (spt, RC, W, C)
                a = a.reshape(spt * RC * W, C).astype(jnp.bfloat16)
                # MXU matmul, contraction dim = C, f32 accumulation.
                acts = acts + jnp.dot(a, wv[dh * K + dw],
                                      preferred_element_type=jnp.float32)

        acts = jnp.maximum(acts + bv, 0.0)                     # bias + ReLU (VPU)
        # Partial global-average-pool: per-sample sum over this chunk's pixels.
        acc_ref[...] += acts.reshape(spt, RC * W, Cout).sum(axis=1)
        return carry

    lax.fori_loop(0, n_chunks, chunk_body, 0, unroll=True)
    o_ref[0] = acc_ref[...] * inv_p


# ---------------------------------------------------------------------------
# Synthetic "fid_incv3": returns a tuple of feature blocks (like the real one)
# ---------------------------------------------------------------------------
def fid_incv3(x, params):
    """x: (N, C, H, W) float32 NCHW -> ((N, Cout, 1, 1),)"""
    # TODO(synk): the pretrained torchvision InceptionV3 trunk is not reproduced;
    # only a representative conv+ReLU+GAP feature block with the same tuple /
    # (N, C, 1, 1) output interface is implemented.
    w, bias = params                        # w: (Cout, Cin, K, K), bias: (Cout,)
    N, C, H, W = x.shape
    Cout, Cin, K, K2 = w.shape
    assert Cin == C and K == K2 and K % 2 == 1
    pad = K // 2
    P = H * W

    # --- glue (plain JAX, no im2col): NCHW -> padded NHWC, operands in bf16 ---
    xp = jnp.transpose(x, (0, 2, 3, 1))                                # (N, H, W, C)
    xp = jnp.pad(xp, ((0, 0), (pad, pad), (pad, pad), (0, 0)))
    xp = xp.astype(jnp.bfloat16)                                       # (N, H+2p, W+2p, C)
    w9 = jnp.transpose(w, (2, 3, 1, 0)).reshape(K * K, C, Cout)
    w9 = w9.astype(jnp.bfloat16)                                       # (K*K, C, Cout)
    b2 = bias.reshape(1, Cout).astype(jnp.float32)                     # (1, Cout)

    # --- tiling ---------------------------------------------------------------
    # Samples per grid step: amortize the ~0.35us/step overhead, but keep
    # >= 2 tiles whenever N >= 2 so both v7x TensorCores get a share of the batch.
    spt = max(1, min(N, 2048 // max(1, P)))
    if N >= 2:
        spt = max(1, min(spt, N // 2))
    while N % spt:
        spt -= 1
    num_tiles = N // spt
    # Output rows per in-kernel matmul chunk: ~128 MXU rows per chunk keeps the
    # live (rows, Cout) f32 activation slab to a few vregs (never the full image).
    RC = max(1, min(H, 128 // max(1, spt * W)))
    while H % RC:
        RC -= 1
    n_chunks = H // RC

    Hp, Wp = H + 2 * pad, W + 2 * pad

    feats = pl.pallas_call(
        functools.partial(conv_relu_gap_kernel, spt=spt, W=W, RC=RC, K=K,
                          n_chunks=n_chunks, inv_p=1.0 / P),
        out_shape=jax.ShapeDtypeStruct((num_tiles, spt, Cout), jnp.float32),
        grid_spec=pltpu.PrefetchScalarGridSpec(
            num_scalar_prefetch=0,
            grid=(num_tiles,),
            in_specs=[
                pl.BlockSpec((spt, Hp, Wp, C), lambda t: (t, 0, 0, 0)),
                # Weight / bias blocks are grid-invariant (block index 0) and
                # tiny; at real Inception scale tile C/Cout into the grid, set
                # vmem_limit_bytes, and mark these pipeline_mode=pl.Buffered(1).
                pl.BlockSpec((K * K, C, Cout), lambda t: (0, 0, 0)),
                pl.BlockSpec((1, Cout), lambda t: (0, 0)),
            ],
            out_specs=pl.BlockSpec((1, spt, Cout), lambda t: (t, 0, 0)),
            scratch_shapes=[pltpu.VMEM((spt, Cout), jnp.float32)],
        ),
        compiler_params=pltpu.CompilerParams(
            # Disjoint per-tile output blocks -> batch tiles shard across the
            # two TensorCores on v7x; no-op on single-TC v5e/v6e.
            dimension_semantics=("parallel",)),
        cost_estimate=pl.CostEstimate(
            flops=2 * N * P * (K * K * C) * Cout,
            transcendentals=0,
            bytes_accessed=2 * (N * Hp * Wp * C + K * K * C * Cout)
                           + 4 * (Cout + N * Cout)),
    )(xp, w9, b2)

    feats = feats.reshape(N, Cout)
    # InceptionV3 (FID) returns pooled features of shape (N, C, 1, 1) as block 0.
    return (feats.reshape(N, Cout, 1, 1),)


# ---------------------------------------------------------------------------
# WrapperInceptionV3.forward equivalent
# ---------------------------------------------------------------------------
def wrapper_inception_v3_forward(x, params):
    y = fid_incv3(x, params)
    y = y[0]                  # (N, Cout, 1, 1)
    y = y[:, :, 0, 0]         # (N, Cout)
    return y


if __name__ == "__main__":
    key = jax.random.PRNGKey(0)
    kx, kw, kb = jax.random.split(key, 3)

    N, Cin, H, W = 2, 4, 16, 16
    Cout, K = 128, 3

    x = jax.random.normal(kx, (N, Cin, H, W), dtype=jnp.float32)
    w = jax.random.normal(kw, (Cout, Cin, K, K), dtype=jnp.float32) * 0.05
    bias = jax.random.normal(kb, (Cout,), dtype=jnp.float32) * 0.01

    fwd = jax.jit(wrapper_inception_v3_forward)
    y = fwd(x, (w, bias))
    jax.block_until_ready(y)

    assert y.shape == (N, Cout), y.shape
    assert y.dtype == jnp.float32, y.dtype

    # Pure-JAX reference for the fused conv+bias+ReLU+GAP hot path, using the
    # same bf16 operand quantization the kernel streams (f32 accumulation).
    xq = x.astype(jnp.bfloat16).astype(jnp.float32)
    wq = w.astype(jnp.bfloat16).astype(jnp.float32)
    ref = jax.lax.conv_general_dilated(
        xq, wq, window_strides=(1, 1), padding=((1, 1), (1, 1)),
        dimension_numbers=("NCHW", "OIHW", "NCHW"),
        precision=jax.lax.Precision.HIGHEST)
    ref = jnp.maximum(ref + bias.reshape(1, Cout, 1, 1), 0.0)
    ref = jnp.mean(ref, axis=(2, 3))
    err = float(jnp.max(jnp.abs(y - ref)))
    assert jnp.allclose(y, ref, atol=2e-3, rtol=2e-3), err

    print("KERNEL_OK")
</pallas_src>

<mosaic_0001>
module attributes {stable_mosaic.version = 11 : i64} {
  func.func @conv_relu_gap_kernel(%arg0: i32, %arg1: memref<1x18x18x4xbf16, #tpu.memory_space<vmem>>, %arg2: memref<9x4x128xbf16, #tpu.memory_space<vmem>>, %arg3: memref<1x128xf32, #tpu.memory_space<vmem>>, %arg4: memref<1x1x128xf32, #tpu.memory_space<vmem>>, %arg5: memref<1x128xf32, #tpu.memory_space<vmem>>) attributes {dimension_semantics = [#tpu.dimension_semantics<parallel>], iteration_bounds = array<i64: 2>, scalar_prefetch = 0 : i64, scratch_operands = 1 : i64, tpu.core_type = #tpu.core_type<tc>, window_params = [{transform_indices = @transform_0, window_bounds = array<i64: 1, 18, 18, 4>}, {pipeline_mode = #tpu.pipeline_mode<synchronous>, transform_indices = @transform_1, window_bounds = array<i64: 9, 4, 128>}, {pipeline_mode = #tpu.pipeline_mode<synchronous>, transform_indices = @transform_2, window_bounds = array<i64: 1, 128>}, {transform_indices = @transform_3, window_bounds = array<i64: 1, 1, 128>}]} {
    %c0 = arith.constant 0 : index
    %c0_0 = arith.constant 0 : index
    %c0_1 = arith.constant 0 : index
    %0 = vector.load %arg2[%c0, %c0_0, %c0_1] : memref<9x4x128xbf16, #tpu.memory_space<vmem>>, vector<9x4x128xbf16>
    %c0_2 = arith.constant 0 : index
    %c0_3 = arith.constant 0 : index
    %1 = vector.load %arg3[%c0_2, %c0_3] : memref<1x128xf32, #tpu.memory_space<vmem>>, vector<1x128xf32>
    %cst = arith.constant 0.000000e+00 : f32
    %2 = vector.broadcast %cst : f32 to vector<1x128xf32>
    %c0_4 = arith.constant 0 : index
    %c0_5 = arith.constant 0 : index
    %3 = vector.load %arg5[%c0_4, %c0_5] : memref<1x128xf32, #tpu.memory_space<vmem>>, vector<1x128xf32>
    tpu.vector_store %arg5[%c0_4, %c0_5], %2 {strides = array<i32>} : memref<1x128xf32, #tpu.memory_space<vmem>>, vector<1x128xf32>,
    %c0_i32 = arith.constant 0 : i32
    %c8_i32 = arith.constant 8 : i32
    %4 = arith.muli %c0_i32, %c8_i32 : i32
    %5 = tpu.assume_multiple %4, 8 : i32
    %c0_6 = arith.constant 0 : index
    %6 = arith.index_cast %5 : i32 to index
    %c0_7 = arith.constant 0 : index
    %c0_8 = arith.constant 0 : index
    %7 = vector.load %arg1[%c0_6, %6, %c0_7, %c0_8] : memref<1x18x18x4xbf16, #tpu.memory_space<vmem>>, vector<1x10x18x4xbf16>
    %8 = arith.extf %7 : vector<1x10x18x4xbf16> to vector<1x10x18x4xf32>
    %cst_9 = arith.constant 0.000000e+00 : f32
    %9 = vector.broadcast %cst_9 : f32 to vector<128x128xf32>
    %10 = vector.extract_strided_slice %8 {offsets = [0, 0, 0, 0], sizes = [1, 8, 16, 4], strides = [1, 1, 1, 1]} : vector<1x10x18x4xf32> to vector<1x8x16x4xf32>
    %11 = vector.shape_cast %10 : vector<1x8x16x4xf32> to vector<128x4xf32>
    %12 = arith.truncf %11 : vector<128x4xf32> to vector<128x4xbf16>
    %13 = vector.extract_strided_slice %0 {offsets = [0, 0, 0], sizes = [1, 4, 128], strides = [1, 1, 1]} : vector<9x4x128xbf16> to vector<1x4x128xbf16>
    %14 = vector.shape_cast %13 : vector<1x4x128xbf16> to vector<4x128xbf16>
    %cst_10 = arith.constant dense<0.000000e+00> : vector<128x128xf32>
    %15 = tpu.matmul %12, %14, %cst_10 {dimension_numbers = #tpu.dot_dimension_numbers<[1], [0], [0], [1], [0, 0, 1, 1], [], []>} : vector<128x4xbf16>, vector<4x128xbf16>, vector<128x128xf32> -> vector<128x128xf32>
    %16 = arith.addf %9, %15 : vector<128x128xf32>
    %17 = vector.extract_strided_slice %8 {offsets = [0, 0, 1, 0], sizes = [1, 8, 16, 4], strides = [1, 1, 1, 1]} : vector<1x10x18x4xf32> to vector<1x8x16x4xf32>
    %18 = vector.shape_cast %17 : vector<1x8x16x4xf32> to vector<128x4xf32>
    %19 = arith.truncf %18 : vector<128x4xf32> to vector<128x4xbf16>
    %20 = vector.extract_strided_slice %0 {offsets = [1, 0, 0], sizes = [1, 4, 128], strides = [1, 1, 1]} : vector<9x4x128xbf16> to vector<1x4x128xbf16>
    %21 = vector.shape_cast %20 : vector<1x4x128xbf16> to vector<4x128xbf16>
    %cst_11 = arith.constant dense<0.000000e+00> : vector<128x128xf32>
    %22 = tpu.matmul %19, %21, %cst_11 {dimension_numbers = #tpu.dot_dimension_numbers<[1], [0], [0], [1], [0, 0, 1, 1], [], []>} : vector<128x4xbf16>, vector<4x128xbf16>, vector<128x128xf32> -> vector<128x128xf32>
    %23 = arith.addf %16, %22 : vector<128x128xf32>
    %24 = vector.extract_strided_slice %8 {offsets = [0, 0, 2, 0], sizes = [1, 8, 16, 4], strides = [1, 1, 1, 1]} : vector<1x10x18x4xf32> to vector<1x8x16x4xf32>
    %25 = vector.shape_cast %24 : vector<1x8x16x4xf32> to vector<128x4xf32>
    %26 = arith.truncf %25 : vector<128x4xf32> to vector<128x4xbf16>
    %27 = vector.extract_strided_slice %0 {offsets = [2, 0, 0], sizes = [1, 4, 128], strides = [1, 1, 1]} : vector<9x4x128xbf16> to vector<1x4x128xbf16>
    %28 = vector.shape_cast %27 : vector<1x4x128xbf16> to vector<4x128xbf16>
    %cst_12 = arith.constant dense<0.000000e+00> : vector<128x128xf32>
    %29 = tpu.matmul %26, %28, %cst_12 {dimension_numbers = #tpu.dot_dimension_numbers<[1], [0], [0], [1], [0, 0, 1, 1], [], []>} : vector<128x4xbf16>, vector<4x128xbf16>, vector<128x128xf32> -> vector<128x128xf32>
    %30 = arith.addf %23, %29 : vector<128x128xf32>
    %31 = vector.extract_strided_slice %8 {offsets = [0, 1, 0, 0], sizes = [1, 8, 16, 4], strides = [1, 1, 1, 1]} : vector<1x10x18x4xf32> to vector<1x8x16x4xf32>
    %32 = vector.shape_cast %31 : vector<1x8x16x4xf32> to vector<128x4xf32>
    %33 = arith.truncf %32 : vector<128x4xf32> to vector<128x4xbf16>
    %34 = vector.extract_strided_slice %0 {offsets = [3, 0, 0], sizes = [1, 4, 128], strides = [1, 1, 1]} : vector<9x4x128xbf16> to vector<1x4x128xbf16>
    %35 = vector.shape_cast %34 : vector<1x4x128xbf16> to vector<4x128xbf16>
    %cst_13 = arith.constant dense<0.000000e+00> : vector<128x128xf32>
    %36 = tpu.matmul %33, %35, %cst_13 {dimension_numbers = #tpu.dot_dimension_numbers<[1], [0], [0], [1], [0, 0, 1, 1], [], []>} : vector<128x4xbf16>, vector<4x128xbf16>, vector<128x128xf32> -> vector<128x128xf32>
    %37 = arith.addf %30, %36 : vector<128x128xf32>
    %38 = vector.extract_strided_slice %8 {offsets = [0, 1, 1, 0], sizes = [1, 8, 16, 4], strides = [1, 1, 1, 1]} : vector<1x10x18x4xf32> to vector<1x8x16x4xf32>
    %39 = vector.shape_cast %38 : vector<1x8x16x4xf32> to vector<128x4xf32>
    %40 = arith.truncf %39 : vector<128x4xf32> to vector<128x4xbf16>
    %41 = vector.extract_strided_slice %0 {offsets = [4, 0, 0], sizes = [1, 4, 128], strides = [1, 1, 1]} : vector<9x4x128xbf16> to vector<1x4x128xbf16>
    %42 = vector.shape_cast %41 : vector<1x4x128xbf16> to vector<4x128xbf16>
    %cst_14 = arith.constant dense<0.000000e+00> : vector<128x128xf32>
    %43 = tpu.matmul %40, %42, %cst_14 {dimension_numbers = #tpu.dot_dimension_numbers<[1], [0], [0], [1], [0, 0, 1, 1], [], []>} : vector<128x4xbf16>, vector<4x128xbf16>, vector<128x128xf32> -> vector<128x128xf32>
    %44 = arith.addf %37, %43 : vector<128x128xf32>
    %45 = vector.extract_strided_slice %8 {offsets = [0, 1, 2, 0], sizes = [1, 8, 16, 4], strides = [1, 1, 1, 1]} : vector<1x10x18x4xf32> to vector<1x8x16x4xf32>
    %46 = vector.shape_cast %45 : vector<1x8x16x4xf32> to vector<128x4xf32>
    %47 = arith.truncf %46 : vector<128x4xf32> to vector<128x4xbf16>
    %48 = vector.extract_strided_slice %0 {offsets = [5, 0, 0], sizes = [1, 4, 128], strides = [1, 1, 1]} : vector<9x4x128xbf16> to vector<1x4x128xbf16>
    %49 = vector.shape_cast %48 : vector<1x4x128xbf16> to vector<4x128xbf16>
    %cst_15 = arith.constant dense<0.000000e+00> : vector<128x128xf32>
    %50 = tpu.matmul %47, %49, %cst_15 {dimension_numbers = #tpu.dot_dimension_numbers<[1], [0], [0], [1], [0, 0, 1, 1], [], []>} : vector<128x4xbf16>, vector<4x128xbf16>, vector<128x128xf32> -> vector<128x128xf32>
    %51 = arith.addf %44, %50 : vector<128x128xf32>
    %52 = vector.extract_strided_slice %8 {offsets = [0, 2, 0, 0], sizes = [1, 8, 16, 4], strides = [1, 1, 1, 1]} : vector<1x10x18x4xf32> to vector<1x8x16x4xf32>
    %53 = vector.shape_cast %52 : vector<1x8x16x4xf32> to vector<128x4xf32>
    %54 = arith.truncf %53 : vector<128x4xf32> to vector<128x4xbf16>
    %55 = vector.extract_strided_slice %0 {offsets = [6, 0, 0], sizes = [1, 4, 128], strides = [1, 1, 1]} : vector<9x4x128xbf16> to vector<1x4x128xbf16>
    %56 = vector.shape_cast %55 : vector<1x4x128xbf16> to vector<4x128xbf16>
    %cst_16 = arith.constant dense<0.000000e+00> : vector<128x128xf32>
    %57 = tpu.matmul %54, %56, %cst_16 {dimension_numbers = #tpu.dot_dimension_numbers<[1], [0], [0], [1], [0, 0, 1, 1], [], []>} : vector<128x4xbf16>, vector<4x128xbf16>, vector<128x128xf32> -> vector<128x128xf32>
    %58 = arith.addf %51, %57 : vector<128x128xf32>
    %59 = vector.extract_strided_slice %8 {offsets = [0, 2, 1, 0], sizes = [1, 8, 16, 4], strides = [1, 1, 1, 1]} : vector<1x10x18x4xf32> to vector<1x8x16x4xf32>
    %60 = vector.shape_cast %59 : vector<1x8x16x4xf32> to vector<128x4xf32>
    %61 = arith.truncf %60 : vector<128x4xf32> to vector<128x4xbf16>
    %62 = vector.extract_strided_slice %0 {offsets = [7, 0, 0], sizes = [1, 4, 128], strides = [1, 1, 1]} : vector<9x4x128xbf16> to vector<1x4x128xbf16>
    %63 = vector.shape_cast %62 : vector<1x4x128xbf16> to vector<4x128xbf16>
    %cst_17 = arith.constant dense<0.000000e+00> : vector<128x128xf32>
    %64 = tpu.matmul %61, %63, %cst_17 {dimension_numbers = #tpu.dot_dimension_numbers<[1], [0], [0], [1], [0, 0, 1, 1], [], []>} : vector<128x4xbf16>, vector<4x128xbf16>, vector<128x128xf32> -> vector<128x128xf32>
    %65 = arith.addf %58, %64 : vector<128x128xf32>
    %66 = vector.extract_strided_slice %8 {offsets = [0, 2, 2, 0], sizes = [1, 8, 16, 4], strides = [1, 1, 1, 1]} : vector<1x10x18x4xf32> to vector<1x8x16x4xf32>
    %67 = vector.shape_cast %66 : vector<1x8x16x4xf32> to vector<128x4xf32>
    %68 = arith.truncf %67 : vector<128x4xf32> to vector<128x4xbf16>
    %69 = vector.extract_strided_slice %0 {offsets = [8, 0, 0], sizes = [1, 4, 128], strides = [1, 1, 1]} : vector<9x4x128xbf16> to vector<1x4x128xbf16>
    %70 = vector.shape_cast %69 : vector<1x4x128xbf16> to vector<4x128xbf16>
    %cst_18 = arith.constant dense<0.000000e+00> : vector<128x128xf32>
    %71 = tpu.matmul %68, %70, %cst_18 {dimension_numbers = #tpu.dot_dimension_numbers<[1], [0], [0], [1], [0, 0, 1, 1], [], []>} : vector<128x4xbf16>, vector<4x128xbf16>, vector<128x128xf32> -> vector<128x128xf32>
    %72 = arith.addf %65, %71 : vector<128x128xf32>
    %73 = vector.broadcast %1 : vector<1x128xf32> to vector<128x128xf32>
    %74 = arith.addf %72, %73 : vector<128x128xf32>
    %cst_19 = arith.constant 0.000000e+00 : f32
    %75 = vector.broadcast %cst_19 : f32 to vector<128x128xf32>
    %76 = arith.maximumf %74, %75 : vector<128x128xf32>
    %c0_20 = arith.constant 0 : index
    %c0_21 = arith.constant 0 : index
    %77 = vector.load %arg5[%c0_20, %c0_21] : memref<1x128xf32, #tpu.memory_space<vmem>>, vector<1x128xf32>
    %78 = vector.shape_cast %76 : vector<128x128xf32> to vector<1x128x128xf32>
    %cst_22 = arith.constant dense<0.000000e+00> : vector<1x128xf32>
    %79 = vector.multi_reduction <add>, %78, %cst_22 [1] : vector<1x128x128xf32> to vector<1x128xf32>
    %80 = arith.addf %77, %79 : vector<1x128xf32>
    %c0_23 = arith.constant 0 : index
    %c0_24 = arith.constant 0 : index
    %81 = vector.load %arg5[%c0_23, %c0_24] : memref<1x128xf32, #tpu.memory_space<vmem>>, vector<1x128xf32>
    tpu.vector_store %arg5[%c0_23, %c0_24], %80 {strides = array<i32>} : memref<1x128xf32, #tpu.memory_space<vmem>>, vector<1x128xf32>,
    %c1_i32 = arith.constant 1 : i32
    %c8_i32_25 = arith.constant 8 : i32
    %82 = arith.muli %c1_i32, %c8_i32_25 : i32
    %83 = tpu.assume_multiple %82, 8 : i32
    %c0_26 = arith.constant 0 : index
    %84 = arith.index_cast %83 : i32 to index
    %c0_27 = arith.constant 0 : index
    %c0_28 = arith.constant 0 : index
    %85 = vector.load %arg1[%c0_26, %84, %c0_27, %c0_28] : memref<1x18x18x4xbf16, #tpu.memory_space<vmem>>, vector<1x10x18x4xbf16>
    %86 = arith.extf %85 : vector<1x10x18x4xbf16> to vector<1x10x18x4xf32>
    %cst_29 = arith.constant 0.000000e+00 : f32
    %87 = vector.broadcast %cst_29 : f32 to vector<128x128xf32>
    %88 = vector.extract_strided_slice %86 {offsets = [0, 0, 0, 0], sizes = [1, 8, 16, 4], strides = [1, 1, 1, 1]} : vector<1x10x18x4xf32> to vector<1x8x16x4xf32>
    %89 = vector.shape_cast %88 : vector<1x8x16x4xf32> to vector<128x4xf32>
    %90 = arith.truncf %89 : vector<128x4xf32> to vector<128x4xbf16>
    %91 = vector.extract_strided_slice %0 {offsets = [0, 0, 0], sizes = [1, 4, 128], strides = [1, 1, 1]} : vector<9x4x128xbf16> to vector<1x4x128xbf16>
    %92 = vector.shape_cast %91 : vector<1x4x128xbf16> to vector<4x128xbf16>
    %cst_30 = arith.constant dense<0.000000e+00> : vector<128x128xf32>
    %93 = tpu.matmul %90, %92, %cst_30 {dimension_numbers = #tpu.dot_dimension_numbers<[1], [0], [0], [1], [0, 0, 1, 1], [], []>} : vector<128x4xbf16>, vector<4x128xbf16>, vector<128x128xf32> -> vector<128x128xf32>
    %94 = arith.addf %87, %93 : vector<128x128xf32>
    %95 = vector.extract_strided_slice %86 {offsets = [0, 0, 1, 0], sizes = [1, 8, 16, 4], strides = [1, 1, 1, 1]} : vector<1x10x18x4xf32> to vector<1x8x16x4xf32>
    %96 = vector.shape_cast %95 : vector<1x8x16x4xf32> to vector<128x4xf32>
    %97 = arith.truncf %96 : vector<128x4xf32> to vector<128x4xbf16>
    %98 = vector.extract_strided_slice %0 {offsets = [1, 0, 0], sizes = [1, 4, 128], strides = [1, 1, 1]} : vector<9x4x128xbf16> to vector<1x4x128xbf16>
    %99 = vector.shape_cast %98 : vector<1x4x128xbf16> to vector<4x128xbf16>
    %cst_31 = arith.constant dense<0.000000e+00> : vector<128x128xf32>
    %100 = tpu.matmul %97, %99, %cst_31 {dimension_numbers = #tpu.dot_dimension_numbers<[1], [0], [0], [1], [0, 0, 1, 1], [], []>} : vector<128x4xbf16>, vector<4x128xbf16>, vector<128x128xf32> -> vector<128x128xf32>
    %101 = arith.addf %94, %100 : vector<128x128xf32>
    %102 = vector.extract_strided_slice %86 {offsets = [0, 0, 2, 0], sizes = [1, 8, 16, 4], strides = [1, 1, 1, 1]} : vector<1x10x18x4xf32> to vector<1x8x16x4xf32>
    %103 = vector.shape_cast %102 : vector<1x8x16x4xf32> to vector<128x4xf32>
    %104 = arith.truncf %103 : vector<128x4xf32> to vector<128x4xbf16>
    %105 = vector.extract_strided_slice %0 {offsets = [2, 0, 0], sizes = [1, 4, 128], strides = [1, 1, 1]} : vector<9x4x128xbf16> to vector<1x4x128xbf16>
    %106 = vector.shape_cast %105 : vector<1x4x128xbf16> to vector<4x128xbf16>
    %cst_32 = arith.constant dense<0.000000e+00> : vector<128x128xf32>
    %107 = tpu.matmul %104, %106, %cst_32 {dimension_numbers = #tpu.dot_dimension_numbers<[1], [0], [0], [1], [0, 0, 1, 1], [], []>} : vector<128x4xbf16>, vector<4x128xbf16>, vector<128x128xf32> -> vector<128x128xf32>
    %108 = arith.addf %101, %107 : vector<128x128xf32>
    %109 = vector.extract_strided_slice %86 {offsets = [0, 1, 0, 0], sizes = [1, 8, 16, 4], strides = [1, 1, 1, 1]} : vector<1x10x18x4xf32> to vector<1x8x16x4xf32>
    %110 = vector.shape_cast %109 : vector<1x8x16x4xf32> to vector<128x4xf32>
    %111 = arith.truncf %110 : vector<128x4xf32> to vector<128x4xbf16>
    %112 = vector.extract_strided_slice %0 {offsets = [3, 0, 0], sizes = [1, 4, 128], strides = [1, 1, 1]} : vector<9x4x128xbf16> to vector<1x4x128xbf16>
    %113 = vector.shape_cast %112 : vector<1x4x128xbf16> to vector<4x128xbf16>
    %cst_33 = arith.constant dense<0.000000e+00> : vector<128x128xf32>
    %114 = tpu.matmul %111, %113, %cst_33 {dimension_numbers = #tpu.dot_dimension_numbers<[1], [0], [0], [1], [0, 0, 1, 1], [], []>} : vector<128x4xbf16>, vector<4x128xbf16>, vector<128x128xf32> -> vector<128x128xf32>
    %115 = arith.addf %108, %114 : vector<128x128xf32>
    %116 = vector.extract_strided_slice %86 {offsets = [0, 1, 1, 0], sizes = [1, 8, 16, 4], strides = [1, 1, 1, 1]} : vector<1x10x18x4xf32> to vector<1x8x16x4xf32>
    %117 = vector.shape_cast %116 : vector<1x8x16x4xf32> to vector<128x4xf32>
    %118 = arith.truncf %117 : vector<128x4xf32> to vector<128x4xbf16>
    %119 = vector.extract_strided_slice %0 {offsets = [4, 0, 0], sizes = [1, 4, 128], strides = [1, 1, 1]} : vector<9x4x128xbf16> to vector<1x4x128xbf16>
    %120 = vector.shape_cast %119 : vector<1x4x128xbf16> to vector<4x128xbf16>
    %cst_34 = arith.constant dense<0.000000e+00> : vector<128x128xf32>
    %121 = tpu.matmul %118, %120, %cst_34 {dimension_numbers = #tpu.dot_dimension_numbers<[1], [0], [0], [1], [0, 0, 1, 1], [], []>} : vector<128x4xbf16>, vector<4x128xbf16>, vector<128x128xf32> -> vector<128x128xf32>
    %122 = arith.addf %115, %121 : vector<128x128xf32>
    %123 = vector.extract_strided_slice %86 {offsets = [0, 1, 2, 0], sizes = [1, 8, 16, 4], strides = [1, 1, 1, 1]} : vector<1x10x18x4xf32> to vector<1x8x16x4xf32>
    %124 = vector.shape_cast %123 : vector<1x8x16x4xf32> to vector<128x4xf32>
    %125 = arith.truncf %124 : vector<128x4xf32> to vector<128x4xbf16>
    %126 = vector.extract_strided_slice %0 {offsets = [5, 0, 0], sizes = [1, 4, 128], strides = [1, 1, 1]} : vector<9x4x128xbf16> to vector<1x4x128xbf16>
    %127 = vector.shape_cast %126 : vector<1x4x128xbf16> to vector<4x128xbf16>
    %cst_35 = arith.constant dense<0.000000e+00> : vector<128x128xf32>
    %128 = tpu.matmul %125, %127, %cst_35 {dimension_numbers = #tpu.dot_dimension_numbers<[1], [0], [0], [1], [0, 0, 1, 1], [], []>} : vector<128x4xbf16>, vector<4x128xbf16>, vector<128x128xf32> -> vector<128x128xf32>
    %129 = arith.addf %122, %128 : vector<128x128xf32>
    %130 = vector.extract_strided_slice %86 {offsets = [0, 2, 0, 0], sizes = [1, 8, 16, 4], strides = [1, 1, 1, 1]} : vector<1x10x18x4xf32> to vector<1x8x16x4xf32>
    %131 = vector.shape_cast %130 : vector<1x8x16x4xf32> to vector<128x4xf32>
    %132 = arith.truncf %131 : vector<128x4xf32> to vector<128x4xbf16>
    %133 = vector.extract_strided_slice %0 {offsets = [6, 0, 0], sizes = [1, 4, 128], strides = [1, 1, 1]} : vector<9x4x128xbf16> to vector<1x4x128xbf16>
    %134 = vector.shape_cast %133 : vector<1x4x128xbf16> to vector<4x128xbf16>
    %cst_36 = arith.constant dense<0.000000e+00> : vector<128x128xf32>
    %135 = tpu.matmul %132, %134, %cst_36 {dimension_numbers = #tpu.dot_dimension_numbers<[1], [0], [0], [1], [0, 0, 1, 1], [], []>} : vector<128x4xbf16>, vector<4x128xbf16>, vector<128x128xf32> -> vector<128x128xf32>
    %136 = arith.addf %129, %135 : vector<128x128xf32>
    %137 = vector.extract_strided_slice %86 {offsets = [0, 2, 1, 0], sizes = [1, 8, 16, 4], strides = [1, 1, 1, 1]} : vector<1x10x18x4xf32> to vector<1x8x16x4xf32>
    %138 = vector.shape_cast %137 : vector<1x8x16x4xf32> to vector<128x4xf32>
    %139 = arith.truncf %138 : vector<128x4xf32> to vector<128x4xbf16>
    %140 = vector.extract_strided_slice %0 {offsets = [7, 0, 0], sizes = [1, 4, 128], strides = [1, 1, 1]} : vector<9x4x128xbf16> to vector<1x4x128xbf16>
    %141 = vector.shape_cast %140 : vector<1x4x128xbf16> to vector<4x128xbf16>
    %cst_37 = arith.constant dense<0.000000e+00> : vector<128x128xf32>
    %142 = tpu.matmul %139, %141, %cst_37 {dimension_numbers = #tpu.dot_dimension_numbers<[1], [0], [0], [1], [0, 0, 1, 1], [], []>} : vector<128x4xbf16>, vector<4x128xbf16>, vector<128x128xf32> -> vector<128x128xf32>
    %143 = arith.addf %136, %142 : vector<128x128xf32>
    %144 = vector.extract_strided_slice %86 {offsets = [0, 2, 2, 0], sizes = [1, 8, 16, 4], strides = [1, 1, 1, 1]} : vector<1x10x18x4xf32> to vector<1x8x16x4xf32>
    %145 = vector.shape_cast %144 : vector<1x8x16x4xf32> to vector<128x4xf32>
    %146 = arith.truncf %145 : vector<128x4xf32> to vector<128x4xbf16>
    %147 = vector.extract_strided_slice %0 {offsets = [8, 0, 0], sizes = [1, 4, 128], strides = [1, 1, 1]} : vector<9x4x128xbf16> to vector<1x4x128xbf16>
    %148 = vector.shape_cast %147 : vector<1x4x128xbf16> to vector<4x128xbf16>
    %cst_38 = arith.constant dense<0.000000e+00> : vector<128x128xf32>
    %149 = tpu.matmul %146, %148, %cst_38 {dimension_numbers = #tpu.dot_dimension_numbers<[1], [0], [0], [1], [0, 0, 1, 1], [], []>} : vector<128x4xbf16>, vector<4x128xbf16>, vector<128x128xf32> -> vector<128x128xf32>
    %150 = arith.addf %143, %149 : vector<128x128xf32>
    %151 = vector.broadcast %1 : vector<1x128xf32> to vector<128x128xf32>
    %152 = arith.addf %150, %151 : vector<128x128xf32>
    %cst_39 = arith.constant 0.000000e+00 : f32
    %153 = vector.broadcast %cst_39 : f32 to vector<128x128xf32>
    %154 = arith.maximumf %152, %153 : vector<128x128xf32>
    %c0_40 = arith.constant 0 : index
    %c0_41 = arith.constant 0 : index
    %155 = vector.load %arg5[%c0_40, %c0_41] : memref<1x128xf32, #tpu.memory_space<vmem>>, vector<1x128xf32>
    %156 = vector.shape_cast %154 : vector<128x128xf32> to vector<1x128x128xf32>
    %cst_42 = arith.constant dense<0.000000e+00> : vector<1x128xf32>
    %157 = vector.multi_reduction <add>, %156, %cst_42 [1] : vector<1x128x128xf32> to vector<1x128xf32>
    %158 = arith.addf %155, %157 : vector<1x128xf32>
    %c0_43 = arith.constant 0 : index
    %c0_44 = arith.constant 0 : index
    %159 = vector.load %arg5[%c0_43, %c0_44] : memref<1x128xf32, #tpu.memory_space<vmem>>, vector<1x128xf32>
    tpu.vector_store %arg5[%c0_43, %c0_44], %158 {strides = array<i32>} : memref<1x128xf32, #tpu.memory_space<vmem>>, vector<1x128xf32>,
    %c2_i32 = arith.constant 2 : i32
    %c0_45 = arith.constant 0 : index
    %c0_46 = arith.constant 0 : index
    %160 = vector.load %arg5[%c0_45, %c0_46] : memref<1x128xf32, #tpu.memory_space<vmem>>, vector<1x128xf32>
    %cst_47 = arith.constant 3.906250e-03 : f32
    %161 = vector.broadcast %cst_47 : f32 to vector<1x128xf32>
    %162 = arith.mulf %160, %161 : vector<1x128xf32>
    %c0_48 = arith.constant 0 : index
    %c0_49 = arith.constant 0 : index
    %c0_50 = arith.constant 0 : index
    %163 = vector.load %arg4[%c0_48, %c0_49, %c0_50] : memref<1x1x128xf32, #tpu.memory_space<vmem>>, vector<1x1x128xf32>
    %164 = vector.shape_cast %163 : vector<1x1x128xf32> to vector<1x128xf32>
    %165 = vector.shape_cast %162 : vector<1x128xf32> to vector<1x1x128xf32>
    tpu.vector_store %arg4[%c0_48, %c0_49, %c0_50], %165 {strides = array<i32>} : memref<1x1x128xf32, #tpu.memory_space<vmem>>, vector<1x1x128xf32>,
    return
  }
  func.func @transform_0(%arg0: i32) -> (i32, i32, i32, i32) {
    %c0_i32 = arith.constant 0 : i32
    %c0_i32_0 = arith.constant 0 : i32
    %c0_i32_1 = arith.constant 0 : i32
    %c0_i32_2 = arith.constant 0 : i32
    return %arg0, %c0_i32, %c0_i32_0, %c0_i32_1 : i32, i32, i32, i32
  }
  func.func @transform_1(%arg0: i32) -> (i32, i32, i32) {
    %c0_i32 = arith.constant 0 : i32
    %c0_i32_0 = arith.constant 0 : i32
    %c0_i32_1 = arith.constant 0 : i32
    %c0_i32_2 = arith.constant 0 : i32
    return %c0_i32, %c0_i32_0, %c0_i32_1 : i32, i32, i32
  }
  func.func @transform_2(%arg0: i32) -> (i32, i32) {
    %c0_i32 = arith.constant 0 : i32
    %c0_i32_0 = arith.constant 0 : i32
    %c0_i32_1 = arith.constant 0 : i32
    return %c0_i32, %c0_i32_0 : i32, i32
  }
  func.func @transform_3(%arg0: i32) -> (i32, i32, i32) {
    %c0_i32 = arith.constant 0 : i32
    %c0_i32_0 = arith.constant 0 : i32
    %c0_i32_1 = arith.constant 0 : i32
    return %arg0, %c0_i32, %c0_i32_0 : i32, i32, i32
  }
}

</mosaic_0001>

<bundles_post_ra>
// kernel: wrapper_inception_v3_forward.1
= control target key start
LH: loop header
LB: loop body
LE: loop exit
PB: predicated region body
PF: predicated region fallthrough
CT: control target
= control target key end

     0   :  { %8 = vsyncpa [#allocation4], 0  ;;  %s5492_s0 = inlined_call_operand.vmem [shape: bf16[2,18,18,4], index: 0, kind: input, shape index: {}]   ;;  %s5493_s1 = inlined_call_operand.vmem [shape: bf16[9,4,128], index: 1, kind: input, shape index: {}]   ;;  %s5494_s2 = inlined_call_operand.vmem [shape: f32[1,128], index: 2, kind: input, shape index: {}]   ;;  %s5495_s3 = inlined_call_operand.hbm [shape: f32[2,1,128], index: 3, kind: output, shape index: {}]  }
   0x1   :  { %10 = vsyncpa [#allocation4 + $0x1], 0  ;;  %s3949_s12 = smov 0   ;;  %s3951_s13 = smov 0  }
   0x2   :  { %s3953_s14 = smov 0   ;;  %s3955_s15 = smov 0  }
   0x3 LB: > { %s3970_s16 = sadd.s32 4294967295, %s3925_s15   ;;  %s3077_s17 = sadd.s32 4294967294, %s3925_s15   ;;  %s3925_s15 = sphi %s3955_s15, %s5613_s15   ;;  %s3921_s14 = sphi %s3953_s14, %s5612_s14   ;;  %s3917_s13 = sphi %s3951_s13, %s5611_s13   ;;  %s3913_s12 = sphi %s3949_s12, %s5610_s12  }
   0x4   : > { %s3974_s18 = sadd.s32 1, %s3925_s15   ;;  %s91_s19 = sadd.s32 1, %s3921_s14 }
   0x5   : > { %s88_s20 = ssub.s32 %s3925_s15, %s3974_s18  ;;  %p101_p0 = scmp.ne.s32.totalorder %s3921_s14, %s3917_s13 }
   0x6   : > { %p89_p1 = scmp.eq.s32.totalorder %s88_s20, 0  ;;  %p102_p2 = scmp.eq.s32.totalorder %s3970_s16, 1 }
   0x7   : > { %p107_p3 = scmp.ne.s32.totalorder %s3917_s13, %s3913_s12  ;;  %p108_p4 = scmp.eq.s32.totalorder %s3077_s17, 1 }
   0x8   : > { %s3985_s21 = scalar_select %p89_p1, %s3921_s14, %s91_s19  }
   0x9   : > { %p3987_p5 = por %p102_p2, %p101_p0  ;;  %p3991_p6 = por %p108_p4, %p107_p3 }
   0xa   : > { %p3080_p7 = scmp.ge.s32.totalorder %s3925_s15, 1  ;;  %p140_p8 = scmp.lt.s32.totalorder %s3925_s15, 3 }
   0xc   : > { %p141_p9 = pnand %p3080_p7, %p140_p8 }
   0xe   : > { %144 = sbr.rel (%p141_p9) target bundleno = 566 (0x236), region = 32 }
  0x13   : > { %v4000_v0 = vld [vmem:[%s5493_s1] sm:$0x3]  ;;  %vm365_vm0 = vcmask 1041408   ;;  %v4005_v1 = vld [vmem:[%s5493_s1 + $0x2] sm:$0x3]  ;;  %p163_p10 = scmp.lt.s32.totalorder %s3970_s16, 1 }
  0x14   : > { %3767 = vmatprep.subr.msk.bf16.mxu1 %vm365_vm0, %v4000_v0  ;;  %v4012_v2 = vsel %vm365_vm0, %v4000_v0, 0  ;;  %3766 = vmatprep.subr.msk.bf16.mxu0 %vm365_vm0, %v4005_v1  ;;  %v4018_v3 = vsel %vm365_vm0, %v4005_v1, 0  ;;  %v4023_v4 = vld [vmem:[%s5493_s1 + $0x4] sm:$0x3]  ;;  %v4031_v5 = vld [vmem:[%s5493_s1 + $0x6] sm:$0x3] }
  0x15   : > { %3461 = vmatpush3.bf16.msra.mxu1 %v4012_v2  ;;  %s164_s30 = scalar_select %p163_p10, %s3970_s16, 1  ;;  %3443 = vmatpush3.bf16.msra.mxu0 %v4018_v3  ;;  %vm340_vm1 = vcmask 31744   ;;  %vm275_vm2 = vcmask 1046528   ;;  %v4053_v9 = vsel %vm365_vm0, %v4031_v5, 0  ;;  %v4076_v20 = vld [vmem:[%s5493_s1 + $0xa] sm:$0x3] }
  0x16   : > { %3768 = vmatprep.subr.msk.bf16.mxu0 %vm365_vm0, %v4023_v4  ;;  %3769 = vmatprep.subr.msk.bf16.mxu1 %vm365_vm0, %v4031_v5  ;;  %v4115_v38 = vsel %vm365_vm0, %v4023_v4, 0  ;;  %v4130_v45 = vld [vmem:[%s5493_s1 + $0x8] sm:$0x3]  ;;  %vm590_vm3 = vcmask 1045504   ;;  %s161_s4 = sand.u32 1, %s3917_s13   ;;  %s3277_s5 = sshll.u32 %s3970_s16, 4 }
  0x17   : > { %s3784_s6 = smul.u32 216, %s164_s30  ;;  %s3019_s10 = scalar_lea.hbm %s5495_s3, %s3277_s5 }
  0x18   : > { %s3009_s11 = scalar_lea.sflag [#allocation4], %s161_s4  ;;  %s3928_s19 = smov [#allocation3]  }
  0x19   : > { %s4040_s9 = scalar_lea.vmem %s5492_s0, %s3784_s6  ;;  %s162_s6 = scalar_lea.vmem [#allocation3], %s161_s4 }
  0x1a   : > { %v4043_v6 = vld [vmem:[%s4040_s9] sm:$0xff]   ;;  %v4046_v7 = vld [vmem:[%s4040_s9 + $0xc] sm:$0xff]   ;;  %v4049_v8 = vld [vmem:[%s4040_s9 + $0x8] sm:$0x1]  ;;  %s3021_s7 = sshll.u32 %s162_s6, 4  ;;  %s3869_s20 = sshll.u32 %s3928_s19, 4  ;;  %s3022_s7 = int_to_ptr.vmem [resolvable:$true] %s3021_s7  ;;  %s3870_s20 = int_to_ptr.vmem [resolvable:$false] %s3869_s20 }
  0x1b   : > { %v213_v10 = vunpack.c.l.bf16 %v4043_v6  ;;  %v214_v11 = vunpack.c.h.bf16 %v4043_v6  ;;  %v216_v12 = vunpack.c.l.bf16 %v4046_v7  ;;  %v4059_v13 = vld [vmem:[%s4040_s9 + $0x14] sm:$0x1]  ;;  %v217_v14 = vunpack.c.h.bf16 %v4046_v7  ;;  %3462 = vmatprep.mubr.msk.bf16.mxu1 %vm340_vm1, %v4043_v6  ;;  %v4071_v19 = vld [vmem:[%s4040_s9 + $0x18] sm:$0xff]   ;;  %v4093_v28 = vld [vmem:[%s4040_s9 + $0x24] sm:$0xff]   ;;  %s3865_s17 = scalar_lea.vmem %s3022_s7, 16  ;;  %s3871_s16 = scalar_lea.vmem %s3870_s20, 32 }
  0x1c   : > { %v215_v15 = vunpack.c.l.bf16 %v4049_v8  ;;  %v218_v16 = vunpack.c.l.bf16 %v4059_v13  ;;  %3463 = vmatmul.mubr.msk.bf16.vlgmr.msra.gmra.mxu1 %vm340_vm1, %v4046_v7  ;;  %v219_v27 = vunpack.c.l.bf16 %v4071_v19  ;;  %v220_v31 = vunpack.c.h.bf16 %v4071_v19  ;;  %v4101_v32 = vld [vmem:[%s4040_s9 + $0x20] sm:$0x1]  ;;  %v4104_v33 = vld [vmem:[%s4040_s9 + $0x2c] sm:$0x1]  ;;  %v4107_v34 = vld [vmem:[%s4040_s9 + $0x30] sm:$0xff]   ;;  %p3866_p11 = scmp.ne.s32.totalorder %s3022_s7, %s3865_s17  ;;  %p3872_p0 = scmp.lt.s32.totalorder %s3022_s7, %s3870_s20 }
  0x1d   : > { %v276_v17 = vrot.slane %v213_v10, 1  ;;  %v277_v18 = vrot.slane %v214_v11, 1  ;;  %v281_v21 = vrot.slane %v216_v12, 1  ;;  %v282_v22 = vrot.slane %v217_v14, 1  ;;  %3497 = vmatpush3.bf16.msra.mxu1 %v4053_v9  ;;  %3466 = vmatprep.mubr.msk.bf16.mxu1 %vm340_vm1, %v4071_v19  ;;  %v4148_v52 = vld [vmem:[%s4040_s9 + $0x3c] sm:$0xff]   ;;  %p3873_p1 = scmp.lt.s32.totalorder %s3871_s16, %s3865_s17 }
  0x1e   : > { %v279_v24 = vrot.slane %v215_v15, 1  ;;  %v284_v25 = vrot.slane %v218_v16, 1  ;;  %3771 = vmatprep.subr.msk.bf16.mxu1 %vm365_vm0, %v4076_v20  ;;  %v286_v37 = vrot.slane %v219_v27, 1  ;;  %v287_v39 = vrot.slane %v220_v31, 1  ;;  %v4154_v55 = vld [vmem:[%s4040_s9 + $0x38] sm:$0x1]  ;;  %p3867_p12 = pnand %p3866_p11, %p3987_p5 }
  0x1f   : > { %v278_v23 = vsel %vm275_vm2, %v276_v17, %v277_v18  ;;  %v283_v26 = vsel %vm275_vm2, %v281_v21, %v282_v22  ;;  %v222_v40 = vunpack.c.l.bf16 %v4093_v28  ;;  %v223_v41 = vunpack.c.h.bf16 %v4093_v28  ;;  %v4157_v56 = vld [vmem:[%s4040_s9 + $0x44] sm:$0x1]  ;;  %v4174_v17 = vld [vmem:[%s4040_s9 + $0x48] sm:$0xff]   ;;  %p3874_p2 = por %p3873_p1, %p3872_p0 }
  0x20   : > { %v280_v29 = vsel %vm275_vm2, %v277_v18, %v279_v24  ;;  %v285_v30 = vsel %vm275_vm2, %v282_v22, %v284_v25  ;;  %v221_v42 = vunpack.c.l.bf16 %v4101_v32  ;;  %v224_v43 = vunpack.c.l.bf16 %v4104_v33  ;;  %v4186_v25 = vld [vmem:[%s4040_s9 + $0x54] sm:$0xff]   ;;  %p3868_p13 = pneg %p3867_p12 }
  0x21   : > { %v332_v35 = vpack.c.bf16 %v280_v29, %v278_v23  ;;  %v4109_v36 = vpack.c.bf16 %v285_v30, %v283_v26  ;;  %v225_v44 = vunpack.c.l.bf16 %v4107_v34  ;;  %v291_v46 = vrot.slane %v222_v40, 1 }
  0x22   : > { %v292_v47 = vrot.slane %v223_v41, 1  ;;  %v288_v48 = vsel %vm275_vm2, %v286_v37, %v287_v39  ;;  %v289_v49 = vrot.slane %v221_v42, 1  ;;  %v294_v50 = vrot.slane %v224_v43, 1  ;;  %p3875_p3 = pnand %p3874_p2, %p3868_p13 }
  0x23   : > { %3444 = vmatprep.mubr.msk.bf16.mxu0 %vm340_vm1, %v332_v35  ;;  %v226_v51 = vunpack.c.h.bf16 %v4107_v34  ;;  %v296_v54 = vrot.slane %v225_v44, 1  ;;  %v228_v62 = vunpack.c.l.bf16 %v4148_v52  ;;  %v229_v63 = vunpack.c.h.bf16 %v4148_v52 }
  0x24   : > { %3445 = vmatmul.mubr.msk.bf16.vlgmr.msra.gmra.mxu0 %vm340_vm1, %v4109_v36  ;;  %3467 = vmatmul.mubr.msk.bf16.gmra.mxu1 %vm340_vm1, %v4093_v28  ;;  %v293_v53 = vsel %vm275_vm2, %v291_v46, %v292_v47  ;;  %v290_v57 = vsel %vm275_vm2, %v287_v39, %v289_v49  ;;  %v295_v58 = vsel %vm275_vm2, %v292_v47, %v294_v50  ;;  %v227_v18 = vunpack.c.l.bf16 %v4154_v55  ;;  %v4204_v49 = vld [vmem:[%s4040_s9 + $0x50] sm:$0x1]  ;;  %v4207_v50 = vld [vmem:[%s4040_s9 + $0x5c] sm:$0x1] }
  0x25   : > { %3479 = vmatpush3.bf16.msra.mxu0 %v4115_v38  ;;  %v297_v59 = vrot.slane %v226_v51, 1  ;;  %v4165_v60 = vpack.c.bf16 %v290_v57, %v288_v48  ;;  %v4167_v61 = vpack.c.bf16 %v295_v58, %v293_v53  ;;  %3470 = vmatprep.mubr.msk.bf16.mxu1 %vm340_vm1, %v4107_v34  ;;  %v230_v21 = vunpack.c.l.bf16 %v4157_v56 }
  0x26   : > { %3770 = vmatprep.subr.msk.bf16.mxu0 %vm365_vm0, %v4130_v45  ;;  %v301_v22 = vrot.slane %v228_v62, 1  ;;  %v302_v23 = vrot.slane %v229_v63, 1  ;;  %v299_v26 = vrot.slane %v227_v18, 1  ;;  %v231_v30 = vunpack.c.l.bf16 %v4174_v17 }
  0x27   : > { %3448 = vmatprep.mubr.msk.bf16.mxu0 %vm340_vm1, %v4165_v60  ;;  %v298_v24 = vsel %vm275_vm2, %v296_v54, %v297_v59  ;;  %v304_v29 = vrot.slane %v230_v21, 1  ;;  %v232_v35 = vunpack.c.h.bf16 %v4174_v17  ;;  %v234_v47 = vunpack.c.l.bf16 %v4186_v25 }
  0x28   : > { %v303_v37 = vsel %vm275_vm2, %v301_v22, %v302_v23  ;;  %v300_v39 = vsel %vm275_vm2, %v297_v59, %v299_v26  ;;  %v235_v48 = vunpack.c.h.bf16 %v4186_v25  ;;  %v306_v54 = vrot.slane %v231_v30, 1 }
  0x29   : > { %v305_v46 = vsel %vm275_vm2, %v302_v23, %v304_v29  ;;  %v4209_v53 = vpack.c.bf16 %v300_v39, %v298_v24  ;;  %v307_v57 = vrot.slane %v232_v35, 1  ;;  %v591_v58 = vrot.slane %v213_v10, 2 }
  0x2a   : > { %v4221_v59 = vpack.c.bf16 %v305_v46, %v303_v37  ;;  %v233_v22 = vunpack.c.l.bf16 %v4204_v49  ;;  %v5496_v23 = vunpack.c.l.bf16 %v4207_v50  ;;  %v592_v24 = vrot.slane %v214_v11, 2 }
  0x2b   : > { %v311_v26 = vrot.slane %v234_v47, 1  ;;  %v312_v29 = vrot.slane %v235_v48, 1  ;;  %v594_v10 = vrot.slane %v215_v15, 2  ;;  %v308_v39 = vsel %vm275_vm2, %v306_v54, %v307_v57 }
  0x2c   : > { %3449 = vmatmul.mubr.msk.bf16.gmra.mxu0 %vm340_vm1, %v4167_v61  ;;  %3471 = vmatmul.mubr.msk.bf16.gmra.mxu1 %vm340_vm1, %v4148_v52  ;;  %v309_v37 = vrot.slane %v233_v22, 1  ;;  %v314_v46 = vrot.slane %v5496_v23, 1  ;;  %v593_v54 = vsel %vm590_vm3, %v591_v58, %v592_v24  ;;  %v601_v58 = vrot.slane %v219_v27, 2 }
  0x2d   : > { %3474 = vmatprep.mubr.msk.bf16.mxu1 %vm340_vm1, %v4174_v17  ;;  %3452 = vmatprep.mubr.msk.bf16.mxu0 %vm340_vm1, %v4209_v53  ;;  %v313_v8 = vsel %vm275_vm2, %v311_v26, %v312_v29  ;;  %v595_v23 = vsel %vm590_vm3, %v592_v24, %v594_v10  ;;  %v597_v26 = vrot.slane %v217_v14, 2  ;;  %v602_v24 = vrot.slane %v220_v31, 2 }
  0x2e   : > { %v310_v6 = vsel %vm275_vm2, %v307_v57, %v309_v37  ;;  %v315_v15 = vsel %vm275_vm2, %v312_v29, %v314_v46  ;;  %v599_v29 = vrot.slane %v218_v16, 2  ;;  %v647_v37 = vpack.c.bf16 %v595_v23, %v593_v54 }
  0x2f   : > { %v4243_v11 = vpack.c.bf16 %v310_v6, %v308_v39  ;;  %v4253_v57 = vpack.c.bf16 %v315_v15, %v313_v8  ;;  %v596_v39 = vrot.slane %v216_v12, 2  ;;  %v4267_v10 = vsel %vm365_vm0, %v4076_v20, 0 }
  0x30   : > { %v604_v12 = vrot.slane %v221_v42, 2  ;;  %v600_v14 = vsel %vm590_vm3, %v597_v26, %v599_v29  ;;  %v603_v16 = vsel %vm590_vm3, %v601_v58, %v602_v24  ;;  %v606_v32 = vrot.slane %v222_v40, 2 }
  0x31   : > { %v598_v13 = vsel %vm590_vm3, %v596_v39, %v597_v26  ;;  %v607_v42 = vrot.slane %v223_v41, 2  ;;  %v4296_v23 = vsel %vm365_vm0, %v4130_v45, 0  ;;  %v609_v46 = vrot.slane %v224_v43, 2  ;;  %v4312_v41 = vld [vmem:[%s5493_s1 + $0xc] sm:$0x3] }
  0x32   : > { %v605_v27 = vsel %vm590_vm3, %v602_v24, %v604_v12  ;;  %v648_v31 = vpack.c.bf16 %v600_v14, %v598_v13  ;;  %v611_v6 = vrot.slane %v225_v44, 2  ;;  %v612_v8 = vrot.slane %v226_v51, 2 }
  0x33   : > { %v4304_v15 = vpack.c.bf16 %v605_v27, %v603_v16  ;;  %v614_v40 = vrot.slane %v227_v18, 2  ;;  %v608_v33 = vsel %vm590_vm3, %v606_v32, %v607_v42  ;;  %v610_v43 = vsel %vm590_vm3, %v607_v42, %v609_v46  ;;  %v209_v27 = vld [vmem:[%s4040_s9 + $0x68] sm:$0x1] }
  0x34   : > { %3453 = vmatmul.mubr.msk.bf16.gmra.mxu0 %vm340_vm1, %v4221_v59  ;;  %3475 = vmatmul.mubr.msk.bf16.gmra.mxu1 %vm340_vm1, %v4186_v25  ;;  %v613_v44 = vsel %vm590_vm3, %v611_v6, %v612_v8  ;;  %v4327_v55 = vpack.c.bf16 %v610_v43, %v608_v33  ;;  %v616_v18 = vrot.slane %v228_v62, 2  ;;  %v617_v54 = vrot.slane %v229_v63, 2  ;;  %v4354_v63 = vld [vmem:[%s4040_s9 + $0x60] sm:$0xff]  }
  0x35   : > { %3498 = vmatprep.mubr.msk.bf16.mxu1 %vm340_vm1, %v4046_v7  ;;  %3456 = vmatprep.mubr.msk.bf16.mxu0 %vm340_vm1, %v4243_v11  ;;  %v4276_v7 = vld [vmem:[%s5493_s1 + $0xe] sm:$0x3]  ;;  %v615_v51 = vsel %vm590_vm3, %v612_v8, %v614_v40  ;;  %v619_v26 = vrot.slane %v230_v21, 2  ;;  %v621_v29 = vrot.slane %v231_v30, 2  ;;  %v624_v58 = vrot.slane %v233_v22, 2 }
  0x36   : > { %v4333_v39 = vpack.c.bf16 %v615_v51, %v613_v44  ;;  %v618_v56 = vsel %vm590_vm3, %v616_v18, %v617_v54  ;;  %v627_v22 = vrot.slane %v235_v48, 2  ;;  %v5511_v12 = vunpack.c.l.bf16 %v4207_v50 }
  0x37   : > { %v620_v62 = vsel %vm590_vm3, %v617_v54, %v619_v26  ;;  %v4381_v50 = vsel %vm365_vm0, %v4276_v7, 0  ;;  %v4396_v16 = vsel %vm365_vm0, %v4312_v41, 0  ;;  %v239_v32 = vunpack.c.l.bf16 %v209_v27 }
  0x38   : > { %v4360_v49 = vpack.c.bf16 %v620_v62, %v618_v56  ;;  %v629_v13 = vrot.slane %v5511_v12, 2  ;;  %v4489_v62 = vld [vmem:[%s4040_s9 + $0x6c] sm:$0xff]   ;;  %v4506_v12 = vld [vmem:[%s4040_s9 + $0x80] sm:$0x1] }
  0x39   : > { %v1048_v6 = vrot.slane %v239_v32, 2  ;;  %v921_v51 = vrot.slane %v239_v32, 1  ;;  %v5503_v32 = vunpack.c.l.bf16 %v4506_v12 }
  0x3a   : > { %v630_v14 = vsel %vm590_vm3, %v627_v22, %v629_v13 }
  0x3c   : > { %3457 = vmatmul.mubr.msk.bf16.gmra.mxu0 %vm340_vm1, %v4253_v57  ;;  %3499 = vmatmul.mubr.msk.bf16.vlgmr.msra.gmra.mxu1 %vm340_vm1, %v4071_v19 }
  0x3d   : > { %3480 = vmatprep.mubr.msk.bf16.mxu0 %vm340_vm1, %v647_v37  ;;  %3533 = vmatpush3.bf16.msra.mxu1 %v4267_v10  ;;  %v622_v37 = vrot.slane %v232_v35, 2  ;;  %v626_v35 = vrot.slane %v234_v47, 2 }
  0x3e   : > { %3502 = vmatprep.mubr.msk.bf16.mxu1 %vm340_vm1, %v4093_v28  ;;  %3773 = vmatprep.subr.msk.bf16.mxu1 %vm365_vm0, %v4276_v7 }
  0x3f   : > { %v623_v21 = vsel %vm590_vm3, %v621_v29, %v622_v37  ;;  %v625_v30 = vsel %vm590_vm3, %v622_v37, %v624_v58  ;;  %v628_v47 = vsel %vm590_vm3, %v626_v35, %v627_v22  ;;  %v4454_v29 = vld [vmem:[%s4040_s9 + $0x6c] sm:$0xff]   ;;  %v4457_v37 = vld [vmem:[%s4040_s9 + $0x74] sm:$0x1]  ;;  %v4501_v22 = vld [vmem:[%s4040_s9 + $0x78] sm:$0xff]  }
  0x40   : > { %v4364_v24 = vpack.c.bf16 %v625_v30, %v623_v21  ;;  %v4377_v48 = vpack.c.bf16 %v630_v14, %v628_v47  ;;  %v4498_v35 = vld [vmem:[%s4040_s9 + $0x74] sm:$0x1]  ;;  %v1647_v47 = vunpack.c.l.bf16 %v4489_v62  ;;  %v1648_v14 = vunpack.c.h.bf16 %v4489_v62 }
  0x44   : > { %3481 = vmatmul.mubr.msk.bf16.vlgmr.msra.gmra.mxu0 %vm340_vm1, %v648_v31  ;;  %3503 = vmatmul.mubr.msk.bf16.gmra.mxu1 %vm340_vm1, %v4107_v34 }
  0x45   : > { %3515 = vmatpush3.bf16.msra.mxu0 %v4296_v23  ;;  %3484 = vmatprep.mubr.msk.bf16.mxu0 %vm340_vm1, %v4304_v15 }
  0x46   : > { %3506 = vmatprep.mubr.msk.bf16.mxu1 %vm340_vm1, %v4148_v52  ;;  %3772 = vmatprep.subr.msk.bf16.mxu0 %vm365_vm0, %v4312_v41 }
  0x4c   : > { %3485 = vmatmul.mubr.msk.bf16.gmra.mxu0 %vm340_vm1, %v4327_v55  ;;  %3507 = vmatmul.mubr.msk.bf16.gmra.mxu1 %vm340_vm1, %v4174_v17 }
  0x4d   : > { %3488 = vmatprep.mubr.msk.bf16.mxu0 %vm340_vm1, %v4333_v39  ;;  %3510 = vmatprep.mubr.msk.bf16.mxu1 %vm340_vm1, %v4186_v25 }
  0x54   : > { %3489 = vmatmul.mubr.msk.bf16.gmra.mxu0 %vm340_vm1, %v4360_v49  ;;  %3511 = vmatmul.mubr.msk.bf16.gmra.mxu1 %vm340_vm1, %v4354_v63 }
  0x55   : > { %3492 = vmatprep.mubr.msk.bf16.mxu0 %vm340_vm1, %v4364_v24  ;;  %3534 = vmatprep.mubr.msk.bf16.mxu1 %vm340_vm1, %v648_v31  ;;  %v238_v31 = vunpack.c.h.bf16 %v4354_v63 }
  0x57   : > { %v1046_v46 = vrot.slane %v238_v31, 2  ;;  %v919_v43 = vrot.slane %v238_v31, 1 }
  0x59   : > { %v1049_v40 = vsel %vm590_vm3, %v1046_v46, %v1048_v6  ;;  %v922_v54 = vsel %vm275_vm2, %v919_v43, %v921_v51  ;;  %v1712_v6 = vrot.slane %v1648_v14, 1  ;;  %v4534_v51 = vld [vmem:[%s4040_s9 + $0x84] sm:$0xff]  }
  0x5c   : > { %3493 = vmatmul.mubr.msk.bf16.gmra.mxu0 %vm340_vm1, %v4377_v48  ;;  %3535 = vmatmul.mubr.msk.bf16.vlgmr.msra.gmra.mxu1 %vm340_vm1, %v4304_v15 }
  0x5d   : > { %3516 = vmatprep.mubr.msk.bf16.mxu0 %vm340_vm1, %v4109_v36  ;;  %3569 = vmatpush3.bf16.msra.mxu1 %v4381_v50  ;;  %v4404_v36 = vld [vmem:[%s5493_s1 + $0x10] sm:$0x3] }
  0x5e   : > { %3538 = vmatprep.mubr.msk.bf16.mxu1 %vm340_vm1, %v4327_v55  ;;  %3775 = vmatprep.subr.msk.bf16.mxu1 %vm365_vm0, %v4005_v1  ;;  %v237_v1 = vunpack.c.l.bf16 %v4354_v63 }
  0x60   : > { %v1045_v42 = vrot.slane %v237_v1, 2  ;;  %v918_v33 = vrot.slane %v237_v1, 1  ;;  %v1650_v1 = vunpack.c.l.bf16 %v4501_v22 }
  0x62   : > { %v1047_v8 = vsel %vm590_vm3, %v1045_v42, %v1046_v46  ;;  %v920_v18 = vsel %vm275_vm2, %v918_v33, %v919_v43  ;;  %v1711_v46 = vrot.slane %v1647_v47, 1  ;;  %v1716_v33 = vrot.slane %v1650_v1, 1 }
  0x63   : > { %v4427_v44 = vpack.c.bf16 %v1049_v40, %v1047_v8  ;;  %v925_v26 = vpack.c.bf16 %v922_v54, %v920_v18  ;;  %v1719_v18 = vrot.slane %v5503_v32, 1  ;;  %v4539_v54 = vld [vmem:[%s4040_s9 + $0x8c] sm:$0x1] }
  0x64   : > { %3517 = vmatmul.mubr.msk.bf16.vlgmr.msra.gmra.mxu0 %vm340_vm1, %v4165_v60  ;;  %3539 = vmatmul.mubr.msk.bf16.gmra.mxu1 %vm340_vm1, %v4333_v39 }
  0x65   : > { %3551 = vmatpush3.bf16.msra.mxu0 %v4396_v16  ;;  %3520 = vmatprep.mubr.msk.bf16.mxu0 %vm340_vm1, %v4167_v61 }
  0x66   : > { %3542 = vmatprep.mubr.msk.bf16.mxu1 %vm340_vm1, %v4360_v49  ;;  %3774 = vmatprep.subr.msk.bf16.mxu0 %vm365_vm0, %v4404_v36 }
  0x6c   : > { %3521 = vmatmul.mubr.msk.bf16.gmra.mxu0 %vm340_vm1, %v4209_v53  ;;  %3543 = vmatmul.mubr.msk.bf16.gmra.mxu1 %vm340_vm1, %v4364_v24 }
  0x6d   : > { %3524 = vmatprep.mubr.msk.bf16.mxu0 %vm340_vm1, %v4221_v59  ;;  %3546 = vmatprep.mubr.msk.bf16.mxu1 %vm340_vm1, %v4377_v48 }
  0x74   : > { %3525 = vmatmul.mubr.msk.bf16.gmra.mxu0 %vm340_vm1, %v4243_v11  ;;  %3547 = vmatmul.mubr.msk.bf16.gmra.mxu1 %vm340_vm1, %v4427_v44 }
  0x75   : > { %3528 = vmatprep.mubr.msk.bf16.mxu0 %vm340_vm1, %v4253_v57  ;;  %3570 = vmatprep.mubr.msk.bf16.mxu1 %vm340_vm1, %v4165_v60  ;;  %v4451_v60 = vsel %vm365_vm0, %v4404_v36, 0 }
  0x7c   : > { %3529 = vmatmul.mubr.msk.bf16.gmra.mxu0 %vm340_vm1, %v925_v26  ;;  %3571 = vmatmul.mubr.msk.bf16.vlgmr.msra.gmra.mxu1 %vm340_vm1, %v4167_v61  ;;  %v241_v61 = vunpack.c.h.bf16 %v4454_v29 }
  0x7d   : > { %3552 = vmatprep.mubr.msk.bf16.mxu0 %vm340_vm1, %v4071_v19  ;;  %3605 = vmatpush3.bf16.msra.mxu1 %v4018_v3  ;;  %v4462_v19 = vld [vmem:[%s4040_s9 + $0x60] sm:$0xff]   ;;  %v4465_v3 = vld [vmem:[%s4040_s9 + $0x68] sm:$0x1] }
  0x7e   : > { %3574 = vmatprep.mubr.msk.bf16.mxu1 %vm340_vm1, %v4209_v53  ;;  %3777 = vmatprep.subr.msk.bf16.mxu1 %vm365_vm0, %v4023_v4  ;;  %v240_v4 = vunpack.c.l.bf16 %v4454_v29  ;;  %v1644_v53 = vunpack.c.l.bf16 %v4462_v19  ;;  %v1645_v58 = vunpack.c.h.bf16 %v4462_v19 }
  0x80   : > { %v1295_v56 = vrot.slane %v240_v4, 1  ;;  %v1706_v21 = vrot.slane %v1644_v53, 1  ;;  %v1707_v30 = vrot.slane %v1645_v58, 1 }
  0x84   : > { %3553 = vmatmul.mubr.msk.bf16.vlgmr.msra.gmra.mxu0 %vm340_vm1, %v4093_v28  ;;  %3575 = vmatmul.mubr.msk.bf16.gmra.mxu1 %vm340_vm1, %v4221_v59  ;;  %v242_v28 = vunpack.c.l.bf16 %v4457_v37  ;;  %v1646_v59 = vunpack.c.l.bf16 %v4465_v3 }
  0x85   : > { %3587 = vmatpush3.bf16.msra.mxu0 %v4451_v60  ;;  %3556 = vmatprep.mubr.msk.bf16.mxu0 %vm340_vm1, %v4107_v34  ;;  %v1296_v34 = vrot.slane %v241_v61, 1 }
  0x86   : > { %3578 = vmatprep.mubr.msk.bf16.mxu1 %vm340_vm1, %v4243_v11  ;;  %3776 = vmatprep.subr.msk.bf16.mxu0 %vm365_vm0, %v4000_v0  ;;  %v1298_v11 = vrot.slane %v242_v28, 1  ;;  %v1709_v0 = vrot.slane %v1646_v59, 1 }
  0x87   : > { %v1297_v13 = vsel %vm275_vm2, %v1295_v56, %v1296_v34  ;;  %v4547_v56 = vld [vmem:[%s4040_s9 + $0x98] sm:$0x1] }
  0x88   : > { %v1299_v27 = vsel %vm275_vm2, %v1296_v34, %v1298_v11  ;;  %v1710_v31 = vsel %vm275_vm2, %v1707_v30, %v1709_v0  ;;  %v1713_v34 = vsel %vm275_vm2, %v1711_v46, %v1712_v6  ;;  %v5502_v11 = vunpack.c.l.bf16 %v4534_v51 }
  0x89   : > { %v1302_v42 = vpack.c.bf16 %v1299_v27, %v1297_v13  ;;  %v5500_v0 = vunpack.c.l.bf16 %v4539_v54 }
  0x8a   : > { %v1721_v46 = vrot.slane %v5502_v11, 1 }
  0x8c   : > { %3557 = vmatmul.mubr.msk.bf16.gmra.mxu0 %vm340_vm1, %v4148_v52  ;;  %3579 = vmatmul.mubr.msk.bf16.gmra.mxu1 %vm340_vm1, %v4253_v57  ;;  %v1649_v52 = vunpack.c.l.bf16 %v4498_v35  ;;  %v5504_v57 = vunpack.c.h.bf16 %v4501_v22 }
  0x8d   : > { %3560 = vmatprep.mubr.msk.bf16.mxu0 %vm340_vm1, %v4174_v17  ;;  %3582 = vmatprep.mubr.msk.bf16.mxu1 %vm340_vm1, %v925_v26  ;;  %v1708_v17 = vsel %vm275_vm2, %v1706_v21, %v1707_v30  ;;  %v4544_v26 = vld [vmem:[%s4040_s9 + $0x90] sm:$0xff]   ;;  %v5501_v30 = vunpack.c.h.bf16 %v4534_v51 }
  0x8e   : > { %v1762_v8 = vpack.c.bf16 %v1710_v31, %v1708_v17  ;;  %v1714_v40 = vrot.slane %v1649_v52, 1  ;;  %v1717_v43 = vrot.slane %v5504_v57, 1  ;;  %v5497_v27 = vunpack.c.h.bf16 %v4544_v26 }
  0x8f   : > { %v5498_v17 = vunpack.c.l.bf16 %v4547_v56 }
  0x90   : > { %v1715_v21 = vsel %vm275_vm2, %v1712_v6, %v1714_v40  ;;  %v1720_v13 = vsel %vm275_vm2, %v1717_v43, %v1719_v18  ;;  %v1722_v6 = vrot.slane %v5501_v30, 1  ;;  %v4574_v40 = vld [vmem:[%s4040_s9 + $0x9c] sm:$0xff]  }
  0x91   : > { %v4563_v31 = vpack.c.bf16 %v1715_v21, %v1713_v34  ;;  %v1729_v18 = vrot.slane %v5498_v17, 1  ;;  %v4583_v34 = vld [vmem:[%s4040_s9 + $0xa4] sm:$0x1]  ;;  %v4586_v21 = vld [vmem:[%s4040_s9 + $0xa8] sm:$0xff]  }
  0x92   : > { %v1723_v17 = vsel %vm275_vm2, %v1721_v46, %v1722_v6  ;;  %v5507_v30 = vunpack.c.l.bf16 %v4586_v21  ;;  %v5506_v32 = vunpack.c.h.bf16 %v4586_v21 }
  0x94   : > { %3561 = vmatmul.mubr.msk.bf16.gmra.mxu0 %vm340_vm1, %v4186_v25  ;;  %3583 = vmatmul.mubr.msk.bf16.gmra.mxu1 %vm340_vm1, %v1302_v42  ;;  %v1718_v25 = vsel %vm275_vm2, %v1716_v33, %v1717_v43  ;;  %v1727_v43 = vrot.slane %v5497_v27, 1  ;;  %v1660_v27 = vunpack.c.h.bf16 %v4574_v40 }
  0x95   : > { %3564 = vmatprep.mubr.msk.bf16.mxu0 %vm340_vm1, %v4354_v63  ;;  %3606 = vmatprep.mubr.msk.bf16.mxu1 %vm340_vm1, %v1762_v8  ;;  %v5499_v63 = vunpack.c.l.bf16 %v4544_v26  ;;  %v4565_v42 = vpack.c.bf16 %v1720_v13, %v1718_v25  ;;  %v1724_v8 = vrot.slane %v5500_v0, 1  ;;  %v4591_v25 = vld [vmem:[%s4040_s9 + $0xb0] sm:$0x1]  ;;  %v1659_v13 = vunpack.c.l.bf16 %v4574_v40 }
  0x96   : > { %v5508_v0 = vunpack.c.l.bf16 %v4583_v34  ;;  %v1730_v11 = vsel %vm275_vm2, %v1727_v43, %v1729_v18  ;;  %v1736_v18 = vrot.slane %v5507_v30, 1 }
  0x97   : > { %v1726_v33 = vrot.slane %v5499_v63, 1  ;;  %v1725_v63 = vsel %vm275_vm2, %v1722_v6, %v1724_v8  ;;  %v1731_v6 = vrot.slane %v1659_v13, 1  ;;  %v1732_v8 = vrot.slane %v1660_v27, 1 }
  0x98   : > { %v4612_v57 = vpack.c.bf16 %v1725_v63, %v1723_v17  ;;  %v4632_v63 = vld [vmem:[%s4040_s9 + $0xbc] sm:$0x1] }
  0x9c   : > { %3565 = vmatmul.mubr.msk.bf16.gmra.mxu0 %vm340_vm1, %v4454_v29  ;;  %3607 = vmatmul.mubr.msk.bf16.vlgmr.msra.gmra.mxu1 %vm340_vm1, %v4563_v31 }
  0x9d   : > { %3588 = vmatprep.mubr.msk.bf16.mxu0 %vm340_vm1, %v4304_v15  ;;  %3641 = vmatpush3.bf16.msra.mxu1 %v4115_v38  ;;  %v1728_v15 = vsel %vm275_vm2, %v1726_v33, %v1727_v43  ;;  %v5505_v38 = vunpack.c.l.bf16 %v4591_v25  ;;  %v1734_v33 = vrot.slane %v5508_v0, 1  ;;  %v4623_v43 = vld [vmem:[%s4040_s9 + $0xb4] sm:$0xff]  }
  0x9e   : > { %3610 = vmatprep.mubr.msk.bf16.mxu1 %vm340_vm1, %v4565_v42  ;;  %3779 = vmatprep.subr.msk.bf16.mxu1 %vm365_vm0, %v4130_v45  ;;  %v4614_v46 = vpack.c.bf16 %v1730_v11, %v1728_v15  ;;  %v1737_v45 = vrot.slane %v5506_v32, 1  ;;  %v1665_v17 = vunpack.c.l.bf16 %v4623_v43  ;;  %v1733_v15 = vsel %vm275_vm2, %v1731_v6, %v1732_v8 }
  0x9f   : > { %v1739_v11 = vrot.slane %v5505_v38, 1  ;;  %v1735_v38 = vsel %vm275_vm2, %v1732_v8, %v1734_v33  ;;  %v1666_v32 = vunpack.c.h.bf16 %v4623_v43 }
  0xa0   : > { %v4652_v0 = vpack.c.bf16 %v1735_v38, %v1733_v15  ;;  %v1741_v6 = vrot.slane %v1665_v17, 1  ;;  %v1423_v38 = vrot.slane %v241_v61, 2  ;;  %v2017_v15 = vrot.slane %v1647_v47, 2 }
  0xa1   : > { %v1740_v30 = vsel %vm275_vm2, %v1737_v45, %v1739_v11  ;;  %v1742_v8 = vrot.slane %v1666_v32, 1  ;;  %v5513_v61 = vunpack.c.l.bf16 %v4506_v12 }
  0xa3   : > { %v2025_v37 = vrot.slane %v5513_v61, 2  ;;  %v5521_v61 = vunpack.c.l.bf16 %v4586_v21 }
  0xa4   : > { %3589 = vmatmul.mubr.msk.bf16.vlgmr.msra.gmra.mxu0 %vm340_vm1, %v4327_v55  ;;  %3611 = vmatmul.mubr.msk.bf16.gmra.mxu1 %vm340_vm1, %v4612_v57  ;;  %v1667_v55 = vunpack.c.l.bf16 %v4632_v63 }
  0xa5   : > { %3623 = vmatpush3.bf16.msra.mxu0 %v4012_v2  ;;  %3592 = vmatprep.mubr.msk.bf16.mxu0 %vm340_vm1, %v4333_v39  ;;  %v1738_v2 = vsel %vm275_vm2, %v1736_v18, %v1737_v45  ;;  %v2012_v18 = vrot.slane %v1644_v53, 2  ;;  %v2013_v45 = vrot.slane %v1645_v58, 2  ;;  %v1743_v53 = vsel %vm275_vm2, %v1741_v6, %v1742_v8 }
  0xa6   : > { %3614 = vmatprep.mubr.msk.bf16.mxu1 %vm340_vm1, %v4614_v46  ;;  %3778 = vmatprep.subr.msk.bf16.mxu0 %vm365_vm0, %v4031_v5  ;;  %v4654_v39 = vpack.c.bf16 %v1740_v30, %v1738_v2  ;;  %v1744_v33 = vrot.slane %v1667_v55, 1  ;;  %v2015_v5 = vrot.slane %v1646_v59, 2  ;;  %v2018_v2 = vrot.slane %v1648_v14, 2 }
  0xa7   : > { %v2014_v58 = vsel %vm590_vm3, %v2012_v18, %v2013_v45  ;;  %v2020_v6 = vrot.slane %v1649_v52, 2 }
  0xa8   : > { %v1745_v30 = vsel %vm275_vm2, %v1742_v8, %v1744_v33  ;;  %v2016_v3 = vsel %vm590_vm3, %v2013_v45, %v2015_v5  ;;  %v2022_v8 = vrot.slane %v1650_v1, 2  ;;  %v2019_v47 = vsel %vm590_vm3, %v2017_v15, %v2018_v2 }
  0xa9   : > { %v4680_v59 = vpack.c.bf16 %v1745_v30, %v1743_v53  ;;  %v2068_v11 = vpack.c.bf16 %v2016_v3, %v2014_v58  ;;  %v2021_v12 = vsel %vm590_vm3, %v2018_v2, %v2020_v6  ;;  %v5515_v45 = vunpack.c.h.bf16 %v4534_v51 }
  0xaa   : > { %v4713_v1 = vpack.c.bf16 %v2021_v12, %v2019_v47  ;;  %v5516_v53 = vunpack.c.l.bf16 %v4539_v54  ;;  %v5517_v58 = vunpack.c.l.bf16 %v4544_v26 }
  0xab   : > { %v2028_v5 = vrot.slane %v5515_v45, 2  ;;  %v4819_v45 = vld [vmem:[%s4040_s9 + $0xc8] sm:$0x1] }
  0xac   : > { %3593 = vmatmul.mubr.msk.bf16.gmra.mxu0 %vm340_vm1, %v4360_v49  ;;  %3615 = vmatmul.mubr.msk.bf16.gmra.mxu1 %vm340_vm1, %v4652_v0  ;;  %v1422_v49 = vrot.slane %v240_v4, 2  ;;  %v5512_v4 = vunpack.c.h.bf16 %v4501_v22  ;;  %v2030_v30 = vrot.slane %v5516_v53, 2  ;;  %v2032_v3 = vrot.slane %v5517_v58, 2 }
  0xad   : > { %3596 = vmatprep.mubr.msk.bf16.mxu0 %vm340_vm1, %v4364_v24  ;;  %3618 = vmatprep.mubr.msk.bf16.mxu1 %vm340_vm1, %v4654_v39  ;;  %v1425_v24 = vrot.slane %v242_v28, 2  ;;  %v1670_v58 = vunpack.c.l.bf16 %v4819_v45 }
  0xae   : > { %v2023_v29 = vrot.slane %v5512_v4, 2  ;;  %v1424_v28 = vsel %vm590_vm3, %v1422_v49, %v1423_v38  ;;  %v5518_v49 = vunpack.c.h.bf16 %v4544_v26  ;;  %v2031_v15 = vsel %vm590_vm3, %v2028_v5, %v2030_v30 }
  0xaf   : > { %v1426_v35 = vsel %vm590_vm3, %v1423_v38, %v1425_v24  ;;  %v5519_v24 = vunpack.c.l.bf16 %v4547_v56  ;;  %v5520_v4 = vunpack.c.l.bf16 %v4583_v34 }
  0xb0   : > { %v2024_v14 = vsel %vm590_vm3, %v2022_v8, %v2023_v29  ;;  %v1429_v52 = vpack.c.bf16 %v1426_v35, %v1424_v28  ;;  %v2033_v38 = vrot.slane %v5518_v49, 2  ;;  %v5522_v28 = vunpack.c.h.bf16 %v4586_v21 }
  0xb2   : > { %v2034_v56 = vsel %vm590_vm3, %v2032_v3, %v2033_v38  ;;  %v2043_v35 = vrot.slane %v5522_v28, 2 }
  0xb4   : > { %3597 = vmatmul.mubr.msk.bf16.gmra.mxu0 %vm340_vm1, %v4377_v48  ;;  %3619 = vmatmul.mubr.msk.bf16.gmra.mxu1 %vm340_vm1, %v4680_v59  ;;  %v2026_v48 = vsel %vm590_vm3, %v2023_v29, %v2025_v37  ;;  %v2040_v29 = vrot.slane %v5520_v4, 2  ;;  %v2042_v37 = vrot.slane %v5521_v61, 2 }
  0xb5   : > { %3600 = vmatprep.mubr.msk.bf16.mxu0 %vm340_vm1, %v4427_v44  ;;  %3642 = vmatprep.mubr.msk.bf16.mxu1 %vm340_vm1, %v2068_v11  ;;  %v4715_v33 = vpack.c.bf16 %v2026_v48, %v2024_v14  ;;  %v5514_v44 = vunpack.c.l.bf16 %v4534_v51  ;;  %v2035_v11 = vrot.slane %v5519_v24, 2  ;;  %v2047_v14 = vrot.slane %v1665_v17, 2 }
  0xb6   : > { %v2048_v48 = vrot.slane %v1666_v32, 2 }
  0xb7   : > { %v2027_v18 = vrot.slane %v5514_v44, 2  ;;  %v2036_v2 = vsel %vm590_vm3, %v2033_v38, %v2035_v11 }
  0xb8   : > { %v4745_v8 = vpack.c.bf16 %v2036_v2, %v2034_v56  ;;  %v2336_v56 = vrot.slane %v1670_v58, 1 }
  0xb9   : > { %v2029_v54 = vsel %vm590_vm3, %v2027_v18, %v2028_v5  ;;  %v4816_v18 = vld [vmem:[%s4040_s9 + $0xc0] sm:$0xff]  }
  0xba   : > { %v4743_v6 = vpack.c.bf16 %v2031_v15, %v2029_v54  ;;  %v1669_v30 = vunpack.c.h.bf16 %v4816_v18 }
  0xbc   : > { %3601 = vmatmul.mubr.msk.bf16.gmra.mxu0 %vm340_vm1, %v1429_v52  ;;  %3643 = vmatmul.mubr.msk.bf16.vlgmr.msra.gmra.mxu1 %vm340_vm1, %v4713_v1  ;;  %v2050_v52 = vrot.slane %v1667_v55, 2  ;;  %v2334_v15 = vrot.slane %v1669_v30, 1 }
  0xbd   : > { %3624 = vmatprep.mubr.msk.bf16.mxu0 %vm340_vm1, %v4462_v19  ;;  %3677 = vmatpush3.bf16.msra.mxu1 %v4296_v23  ;;  %v2037_v23 = vrot.slane %v1659_v13, 2  ;;  %v2038_v19 = vrot.slane %v1660_v27, 2 }
  0xbe   : > { %3646 = vmatprep.mubr.msk.bf16.mxu1 %vm340_vm1, %v4715_v33  ;;  %3781 = vmatprep.subr.msk.bf16.mxu1 %vm365_vm0, %v4312_v41  ;;  %v5523_v41 = vunpack.c.l.bf16 %v4591_v25  ;;  %v2044_v25 = vsel %vm590_vm3, %v2042_v37, %v2043_v35  ;;  %v2051_v17 = vsel %vm590_vm3, %v2048_v48, %v2050_v52  ;;  %v2337_v37 = vsel %vm275_vm2, %v2334_v15, %v2336_v56 }
  0xbf   : > { %v2039_v27 = vsel %vm590_vm3, %v2037_v23, %v2038_v19  ;;  %v2041_v34 = vsel %vm590_vm3, %v2038_v19, %v2040_v29 }
  0xc0   : > { %v2045_v47 = vrot.slane %v5523_v41, 2 }
  0xc2   : > { %v2046_v13 = vsel %vm590_vm3, %v2043_v35, %v2045_v47 }
  0xc3   : > { %v4776_v12 = vpack.c.bf16 %v2046_v13, %v2044_v25 }
  0xc4   : > { %3625 = vmatmul.mubr.msk.bf16.vlgmr.msra.gmra.mxu0 %vm340_vm1, %v4489_v62  ;;  %3647 = vmatmul.mubr.msk.bf16.gmra.mxu1 %vm340_vm1, %v4743_v6 }
  0xc5   : > { %3659 = vmatpush3.bf16.msra.mxu0 %v4053_v9  ;;  %3628 = vmatprep.mubr.msk.bf16.mxu0 %vm340_vm1, %v4501_v22  ;;  %v4774_v9 = vpack.c.bf16 %v2041_v34, %v2039_v27 }
  0xc6   : > { %3650 = vmatprep.mubr.msk.bf16.mxu1 %vm340_vm1, %v4745_v8  ;;  %3780 = vmatprep.subr.msk.bf16.mxu0 %vm365_vm0, %v4076_v20  ;;  %v2049_v20 = vsel %vm590_vm3, %v2047_v14, %v2048_v48 }
  0xc7   : > { %v4794_v32 = vpack.c.bf16 %v2051_v17, %v2049_v20 }
  0xcc   : > { %3629 = vmatmul.mubr.msk.bf16.gmra.mxu0 %vm340_vm1, %v4534_v51  ;;  %3651 = vmatmul.mubr.msk.bf16.gmra.mxu1 %vm340_vm1, %v4774_v9 }
  0xcd   : > { %3632 = vmatprep.mubr.msk.bf16.mxu0 %vm340_vm1, %v4544_v26  ;;  %3654 = vmatprep.mubr.msk.bf16.mxu1 %vm340_vm1, %v4776_v12 }
  0xd4   : > { %3633 = vmatmul.mubr.msk.bf16.gmra.mxu0 %vm340_vm1, %v4574_v40  ;;  %3655 = vmatmul.mubr.msk.bf16.gmra.mxu1 %vm340_vm1, %v4794_v32 }
  0xd5   : > { %3636 = vmatprep.mubr.msk.bf16.mxu0 %vm340_vm1, %v4586_v21  ;;  %3678 = vmatprep.mubr.msk.bf16.mxu1 %vm340_vm1, %v4563_v31 }
  0xdc   : > { %3637 = vmatmul.mubr.msk.bf16.gmra.mxu0 %vm340_vm1, %v4623_v43  ;;  %v3464_v63 = vpop.f32.mrf.mxu1  ;;  %3679 = vmatmul.mubr.msk.bf16.vlgmr.msra.gmra.mxu1 %vm340_vm1, %v4565_v42 }
  0xdd   : > { %3660 = vmatprep.mubr.msk.bf16.mxu0 %vm340_vm1, %v4489_v62  ;;  %3713 = vmatpush3.bf16.msra.mxu1 %v4396_v16 }
  0xde   : > { %3682 = vmatprep.mubr.msk.bf16.mxu1 %vm340_vm1, %v4612_v57  ;;  %v527_v55 = vpop.f32.mrf.mxu1  ;;  %3783 = vmatprep.subr.msk.bf16.mxu1 %vm365_vm0, %v4404_v36  ;;  %v1668_v36 = vunpack.c.l.bf16 %v4816_v18 }
  0xe0   : > { %v3465_v31 = vpop.f32.mrf.mxu1  ;;  %v2333_v54 = vrot.slane %v1668_v36, 1 }
  0xe2   : > { %v530_v44 = vpop.f32.mrf.mxu1  ;;  %v2335_v61 = vsel %vm275_vm2, %v2333_v54, %v2334_v15 }
  0xe3   : > { %v4865_v34 = vpack.c.bf16 %v2337_v37, %v2335_v61 }
  0xe4   : > { %v3446_v5 = vpop.f32.mrf.mxu0  ;;  %3661 = vmatmul.mubr.msk.bf16.vlgmr.msra.gmra.mxu0 %vm340_vm1, %v4501_v22  ;;  %v3468_v16 = vpop.f32.mrf.mxu1  ;;  %3683 = vmatmul.mubr.msk.bf16.gmra.mxu1 %vm340_vm1, %v4614_v46 }
  0xe5   : > { %v4823_v62 = vadd.f32 %v3464_v63, %v3446_v5  ;;  %3695 = vmatpush3.bf16.msra.mxu0 %v4267_v10  ;;  %3664 = vmatprep.mubr.msk.bf16.mxu0 %vm340_vm1, %v4534_v51 }
  0xe6   : > { %v403_v53 = vpop.f32.mrf.mxu0  ;;  %3686 = vmatprep.mubr.msk.bf16.mxu1 %vm340_vm1, %v4652_v0  ;;  %v543_v10 = vpop.f32.mrf.mxu1  ;;  %3782 = vmatprep.subr.msk.bf16.mxu0 %vm365_vm0, %v4276_v7 }
  0xe7   : > { %v4835_v3 = vadd.f32 %v527_v55, %v403_v53 }
  0xe8   : > { %v3447_v49 = vpop.f32.mrf.mxu0  ;;  %v3469_v24 = vpop.f32.mrf.mxu1 }
  0xe9   : > { %v4839_v38 = vadd.f32 %v3465_v31, %v3447_v49 }
  0xea   : > { %v406_v11 = vpop.f32.mrf.mxu0  ;;  %v546_v23 = vpop.f32.mrf.mxu1 }
  0xeb   : > { %v4847_v2 = vadd.f32 %v530_v44, %v406_v11 }
  0xec   : > { %v3450_v19 = vpop.f32.mrf.mxu0  ;;  %3665 = vmatmul.mubr.msk.bf16.gmra.mxu0 %vm340_vm1, %v4544_v26  ;;  %v3472_v4 = vpop.f32.mrf.mxu1  ;;  %3687 = vmatmul.mubr.msk.bf16.gmra.mxu1 %vm340_vm1, %v4654_v39 }
  0xed   : > { %v4851_v7 = vadd.f32 %v3468_v16, %v3450_v19  ;;  %3668 = vmatprep.mubr.msk.bf16.mxu0 %vm340_vm1, %v4574_v40  ;;  %3690 = vmatprep.mubr.msk.bf16.mxu1 %vm340_vm1, %v4680_v59 }
  0xee   : > { %v419_v29 = vpop.f32.mrf.mxu0  ;;  %v559_v35 = vpop.f32.mrf.mxu1 }
  0xef   : > { %v4861_v28 = vadd.f32 %v543_v10, %v419_v29 }
  0xf0   : > { %v3451_v41 = vpop.f32.mrf.mxu0  ;;  %v3473_v27 = vpop.f32.mrf.mxu1 }
  0xf1   : > { %v4863_v47 = vadd.f32 %v3469_v24, %v3451_v41 }
  0xf2   : > { %v422_v25 = vpop.f32.mrf.mxu0  ;;  %v562_v14 = vpop.f32.mrf.mxu1 }
  0xf3   : > { %v4867_v13 = vadd.f32 %v546_v23, %v422_v25 }
  0xf4   : > { %v3454_v48 = vpop.f32.mrf.mxu0  ;;  %3669 = vmatmul.mubr.msk.bf16.gmra.mxu0 %vm340_vm1, %v4586_v21  ;;  %v3476_v20 = vpop.f32.mrf.mxu1  ;;  %3691 = vmatmul.mubr.msk.bf16.gmra.mxu1 %vm340_vm1, %v4865_v34 }
  0xf5   : > { %v4871_v52 = vadd.f32 %v3472_v4, %v3454_v48  ;;  %3672 = vmatprep.mubr.msk.bf16.mxu0 %vm340_vm1, %v4623_v43  ;;  %3714 = vmatprep.mubr.msk.bf16.mxu1 %vm340_vm1, %v4501_v22 }
  0xf6   : > { %v435_v17 = vpop.f32.mrf.mxu0  ;;  %v575_v55 = vpop.f32.mrf.mxu1 }
  0xf7   : > { %v4879_v63 = vadd.f32 %v559_v35, %v435_v17 }
  0xf8   : > { %v3455_v31 = vpop.f32.mrf.mxu0  ;;  %v3477_v5 = vpop.f32.mrf.mxu1 }
  0xf9   : > { %v4881_v44 = vadd.f32 %v3473_v27, %v3455_v31 }
  0xfa   : > { %v438_v16 = vpop.f32.mrf.mxu0  ;;  %v578_v10 = vpop.f32.mrf.mxu1 }
  0xfb   : > { %v4883_v53 = vadd.f32 %v562_v14, %v438_v16 }
  0xfc   : > { %v3458_v49 = vpop.f32.mrf.mxu0  ;;  %3673 = vmatmul.mubr.msk.bf16.gmra.mxu0 %vm340_vm1, %v4816_v18  ;;  %v3500_v11 = vpop.f32.mrf.mxu1  ;;  %3715 = vmatmul.mubr.msk.bf16.vlgmr.msra.gmra.mxu1 %vm340_vm1, %v4534_v51 }
  0xfd   : > { %v4887_v24 = vadd.f32 %v3476_v20, %v3458_v49  ;;  %3696 = vmatprep.mubr.msk.bf16.mxu0 %vm340_vm1, %v4713_v1  ;;  %3749 = vmatpush3.bf16.msra.mxu1 %v4451_v60 }
  0xfe   : > { %v451_v22 = vpop.f32.mrf.mxu0  ;;  %3718 = vmatprep.mubr.msk.bf16.mxu1 %vm340_vm1, %v4544_v26  ;;  %v836_v15 = vpop.f32.mrf.mxu1 }
  0xff   : > { %v4896_v54 = vadd.f32 %v575_v55, %v451_v22 }
 0x100   : > { %v3459_v56 = vpop.f32.mrf.mxu0  ;;  %v3501_v19 = vpop.f32.mrf.mxu1 }
 0x101   : > { %v4898_v23 = vadd.f32 %v3477_v5, %v3459_v56 }
 0x102   : > { %v454_v4 = vpop.f32.mrf.mxu0  ;;  %v839_v51 = vpop.f32.mrf.mxu1 }
 0x103   : > { %v4900_v29 = vadd.f32 %v578_v10, %v454_v4 }
 0x104   : > { %v3482_v61 = vpop.f32.mrf.mxu0  ;;  %3697 = vmatmul.mubr.msk.bf16.vlgmr.msra.gmra.mxu0 %vm340_vm1, %v4715_v33  ;;  %v3504_v26 = vpop.f32.mrf.mxu1  ;;  %3719 = vmatmul.mubr.msk.bf16.gmra.mxu1 %vm340_vm1, %v4574_v40 }
 0x105   : > { %v781_v60 = vadd.f32 %v3482_v61, %v4823_v62  ;;  %3731 = vmatpush3.bf16.msra.mxu0 %v4381_v50  ;;  %3700 = vmatprep.mubr.msk.bf16.mxu0 %vm340_vm1, %v4743_v6  ;;  %v3927_v62 = vmov 0.0  }
 0x106   : > { %v716_v1 = vpop.f32.mrf.mxu0  ;;  %3722 = vmatprep.mubr.msk.bf16.mxu1 %vm340_vm1, %v4586_v21  ;;  %v852_v35 = vpop.f32.mrf.mxu1  ;;  %179 = vst [vmem:[#allocation2] sm:$0x1] %v3927_v62 }
 0x107   : > { %v779_v37 = vadd.f32 %v716_v1, %v4835_v3  ;;  %v4913_v41 = vadd.f32 %v3500_v11, %v781_v60  ;;  %v2460_v11 = vrot.slane %v1670_v58, 2 }
 0x108   : > { %v3483_v27 = vpop.f32.mrf.mxu0  ;;  %v3505_v25 = vpop.f32.mrf.mxu1 }
 0x109   : > { %v782_v50 = vadd.f32 %v3483_v27, %v4839_v38  ;;  %v4916_v40 = vadd.f32 %v836_v15, %v779_v37 }
 0x10a   : > { %v719_v14 = vpop.f32.mrf.mxu0  ;;  %v855_v20 = vpop.f32.mrf.mxu1 }
 0x10b   : > { %v780_v48 = vadd.f32 %v719_v14, %v4847_v2  ;;  %v4919_v17 = vadd.f32 %v3501_v19, %v782_v50  ;;  %v4933_v2 = vld [vmem:[%s4040_s9 + $0xcc] sm:$0xff]  }
 0x10c   : > { %v3486_v21 = vpop.f32.mrf.mxu0  ;;  %3701 = vmatmul.mubr.msk.bf16.gmra.mxu0 %vm340_vm1, %v4745_v8  ;;  %v3508_v55 = vpop.f32.mrf.mxu1  ;;  %3723 = vmatmul.mubr.msk.bf16.gmra.mxu1 %vm340_vm1, %v4623_v43  ;;  %v2458_v43 = vrot.slane %v1669_v30, 2 }
 0x10d   : > { %v785_v3 = vadd.f32 %v3486_v21, %v4851_v7  ;;  %3704 = vmatprep.mubr.msk.bf16.mxu0 %vm340_vm1, %v4774_v9  ;;  %v4928_v38 = vadd.f32 %v839_v51, %v780_v48  ;;  %3726 = vmatprep.mubr.msk.bf16.mxu1 %vm340_vm1, %v4816_v18  ;;  %v2457_v7 = vrot.slane %v1668_v36, 2 }
 0x10e   : > { %v732_v31 = vpop.f32.mrf.mxu0  ;;  %v868_v16 = vpop.f32.mrf.mxu1  ;;  %v2461_v30 = vsel %vm590_vm3, %v2458_v43, %v2460_v11  ;;  %v1672_v11 = vunpack.c.h.bf16 %v4933_v2 }
 0x10f   : > { %v783_v5 = vadd.f32 %v732_v31, %v4861_v28  ;;  %v4936_v10 = vadd.f32 %v3504_v26, %v785_v3  ;;  %v2459_v18 = vsel %vm590_vm3, %v2457_v7, %v2458_v43  ;;  %v3194_v7 = vld [vmem:[%s4040_s9 + $0xd4] sm:$0x1] }
 0x110   : > { %v3487_v49 = vpop.f32.mrf.mxu0  ;;  %v3509_v15 = vpop.f32.mrf.mxu1  ;;  %v2464_v1 = vpack.c.bf16 %v2461_v30, %v2459_v18 }
 0x111   : > { %v786_v22 = vadd.f32 %v3487_v49, %v4863_v47  ;;  %v4945_v56 = vadd.f32 %v852_v35, %v783_v5  ;;  %v1671_v49 = vunpack.c.l.bf16 %v4933_v2 }
 0x112   : > { %v735_v19 = vpop.f32.mrf.mxu0  ;;  %v871_v4 = vpop.f32.mrf.mxu1 }
 0x113   : > { %v784_v28 = vadd.f32 %v735_v19, %v4867_v13  ;;  %v4948_v51 = vadd.f32 %v3505_v25, %v786_v22  ;;  %v2825_v19 = vrot.slane %v1671_v49, 2 }
 0x114   : > { %v3490_v61 = vpop.f32.mrf.mxu0  ;;  %3705 = vmatmul.mubr.msk.bf16.gmra.mxu0 %vm340_vm1, %v4776_v12  ;;  %v3512_v36 = vpop.f32.mrf.mxu1  ;;  %3727 = vmatmul.mubr.msk.bf16.gmra.mxu1 %vm340_vm1, %v4933_v2 }
 0x115   : > { %v789_v45 = vadd.f32 %v3490_v61, %v4871_v52  ;;  %3708 = vmatprep.mubr.msk.bf16.mxu0 %vm340_vm1, %v4794_v32  ;;  %v4959_v58 = vadd.f32 %v855_v20, %v784_v28  ;;  %3750 = vmatprep.mubr.msk.bf16.mxu1 %vm340_vm1, %v4715_v33 }
 0x116   : > { %v748_v47 = vpop.f32.mrf.mxu0  ;;  %v884_v60 = vpop.f32.mrf.mxu1 }
 0x117   : > { %v787_v13 = vadd.f32 %v748_v47, %v4879_v63  ;;  %v4964_v26 = vadd.f32 %v3508_v55, %v789_v45  ;;  %v2701_v47 = vrot.slane %v1671_v49, 1 }
 0x118   : > { %v3491_v52 = vpop.f32.mrf.mxu0  ;;  %v3513_v35 = vpop.f32.mrf.mxu1 }
 0x119   : > { %v790_v37 = vadd.f32 %v3491_v52, %v4881_v44  ;;  %v4967_v27 = vadd.f32 %v868_v16, %v787_v13  ;;  %v2702_v13 = vrot.slane %v1672_v11, 1 }
 0x11a   : > { %v751_v62 = vpop.f32.mrf.mxu0  ;;  %v887_v25 = vpop.f32.mrf.mxu1 }
 0x11b   : > { %v788_v50 = vadd.f32 %v751_v62, %v4883_v53  ;;  %v4970_v14 = vadd.f32 %v3509_v15, %v790_v37 }
 0x11c   : > { %v3494_v48 = vpop.f32.mrf.mxu0  ;;  %3709 = vmatmul.mubr.msk.bf16.gmra.mxu0 %vm340_vm1, %v2464_v1  ;;  %v4974_v63 = vpop.f32.mrf.mxu1  ;;  %3751 = vmatmul.mubr.msk.bf16.vlgmr.msra.gmra.mxu1 %vm340_vm1, %v4743_v6 }
 0x11d   : > { %v793_v33 = vadd.f32 %v3494_v48, %v4887_v24  ;;  %3732 = vmatprep.mubr.msk.bf16.mxu0 %vm340_vm1, %v4565_v42  ;;  %v4980_v44 = vadd.f32 %v871_v4, %v788_v50  ;;  %3754 = vmatprep.mubr.msk.bf16.mxu1 %vm340_vm1, %v4745_v8  ;;  %v2703_v50 = vsel %vm275_vm2, %v2701_v47, %v2702_v13 }
 0x11e   : > { %v764_v53 = vpop.f32.mrf.mxu0  ;;  %v4985_v21 = vpop.f32.mrf.mxu1 }
 0x11f   : > { %v791_v20 = vadd.f32 %v764_v53, %v4896_v54  ;;  %v4987_v24 = vadd.f32 %v3512_v36, %v793_v33 }
 0x120   : > { %v3495_v3 = vpop.f32.mrf.mxu0  ;;  %v4990_v31 = vpop.f32.mrf.mxu1 }
 0x121   : > { %v794_v55 = vadd.f32 %v3495_v3, %v4898_v23  ;;  %v4992_v6 = vadd.f32 %v884_v60, %v791_v20 }
 0x122   : > { %v767_v42 = vpop.f32.mrf.mxu0  ;;  %v4995_v16 = vpop.f32.mrf.mxu1 }
 0x123   : > { %v792_v5 = vadd.f32 %v767_v42, %v4900_v29  ;;  %v4998_v8 = vadd.f32 %v3513_v35, %v794_v55 }
 0x124   : > { %v3518_v54 = vpop.f32.mrf.mxu0  ;;  %3733 = vmatmul.mubr.msk.bf16.vlgmr.msra.gmra.mxu0 %vm340_vm1, %v4612_v57  ;;  %v5005_v23 = vpop.f32.mrf.mxu1  ;;  %3755 = vmatmul.mubr.msk.bf16.gmra.mxu1 %vm340_vm1, %v4774_v9  ;;  %v1673_v57 = vunpack.c.l.bf16 %v3194_v7 }
 0x125   : > { %5524 = vst [vmem:[#allocation6_spill] sm:$0xff] %v4998_v8  ;;  %v5003_v43 = vadd.f32 %v3518_v54, %v4913_v41  ;;  %3736 = vmatprep.mubr.msk.bf16.mxu0 %vm340_vm1, %v4614_v46  ;;  %v5011_v29 = vadd.f32 %v887_v25, %v792_v5  ;;  %3758 = vmatprep.mubr.msk.bf16.mxu1 %vm340_vm1, %v4776_v12  ;;  %v2826_v46 = vrot.slane %v1672_v11, 2 }
 0x126   : > { %v5015_v22 = vpop.f32.mrf.mxu0  ;;  %v5019_v41 = vpop.f32.mrf.mxu1  ;;  %v2828_v4 = vrot.slane %v1673_v57, 2  ;;  %v2704_v52 = vrot.slane %v1673_v57, 1 }
 0x127   : > { %5525 = vst [vmem:[#allocation7_spill] sm:$0xff] %v5011_v29  ;;  %v2827_v36 = vsel %vm590_vm3, %v2825_v19, %v2826_v46 }
 0x128   : > { %v5021_v15 = vpop.f32.mrf.mxu0  ;;  %v5023_v9 = vpop.f32.mrf.mxu1  ;;  %v2829_v30 = vsel %vm590_vm3, %v2826_v46, %v2828_v4  ;;  %v2705_v25 = vsel %vm275_vm2, %v2702_v13, %v2704_v52 }
 0x12a   : > { %v5025_v28 = vpop.f32.mrf.mxu0  ;;  %v5027_v61 = vpop.f32.mrf.mxu1 }
 0x12b   : > { %v1030_v8 = vadd.f32 %v5025_v28, %v4928_v38 }
 0x12c   : > { %v3522_v2 = vpop.f32.mrf.mxu0  ;;  %3737 = vmatmul.mubr.msk.bf16.gmra.mxu0 %vm340_vm1, %v4652_v0  ;;  %v5034_v18 = vpop.f32.mrf.mxu1  ;;  %3759 = vmatmul.mubr.msk.bf16.gmra.mxu1 %vm340_vm1, %v4794_v32  ;;  %v2832_v32 = vpack.c.bf16 %v2829_v30, %v2827_v36 }
 0x12d   : > { %v5032_v12 = vadd.f32 %v3522_v2, %v4936_v10  ;;  %3740 = vmatprep.mubr.msk.bf16.mxu0 %vm340_vm1, %v4654_v39  ;;  %3762 = vmatprep.mubr.msk.bf16.mxu1 %vm340_vm1, %v2464_v1 }
 0x12e   : > { %v5040_v45 = vpop.f32.mrf.mxu0  ;;  %v5045_v0 = vpop.f32.mrf.mxu1 }
 0x130   : > { %v5047_v10 = vpop.f32.mrf.mxu0  ;;  %v5049_v60 = vpop.f32.mrf.mxu1 }
 0x132   : > { %v5051_v37 = vpop.f32.mrf.mxu0  ;;  %v5053_v39 = vpop.f32.mrf.mxu1 }
 0x134   : > { %v3526_v35 = vpop.f32.mrf.mxu0  ;;  %3741 = vmatmul.mubr.msk.bf16.gmra.mxu0 %vm340_vm1, %v4680_v59  ;;  %v5060_v62 = vpop.f32.mrf.mxu1  ;;  %3763 = vmatmul.mubr.msk.bf16.gmra.mxu1 %vm340_vm1, %v2832_v32  ;;  %v2708_v59 = vpack.c.bf16 %v2705_v25, %v2703_v50 }
 0x135   : > { %v5058_v1 = vadd.f32 %v3526_v35, %v4964_v26  ;;  %5526 = vst [vmem:[#allocation8_spill] sm:$0xff] %v5060_v62  ;;  %3744 = vmatprep.mubr.msk.bf16.mxu0 %vm340_vm1, %v4865_v34 }
 0x136   : > { %v5067_v48 = vpop.f32.mrf.mxu0  ;;  %v5069_v33 = vpop.f32.mrf.mxu1 }
 0x137   : > { %5527 = vst [vmem:[#allocation9_spill] sm:$0xff] %v5069_v33 }
 0x138   : > { %v5071_v53 = vpop.f32.mrf.mxu0  ;;  %v5073_v26 = vpop.f32.mrf.mxu1 }
 0x139   : > { %5528 = vst [vmem:[#allocation10_spill] sm:$0xff] %v5073_v26 }
 0x13a   : > { %v5075_v20 = vpop.f32.mrf.mxu0  ;;  %v5077_v3 = vpop.f32.mrf.mxu1 }
 0x13b   : > { %5529 = vst [vmem:[#allocation11_spill] sm:$0xff] %v5077_v3 }
 0x13c   : > { %v3530_v55 = vpop.f32.mrf.mxu0  ;;  %3745 = vmatmul.mubr.msk.bf16.gmra.mxu0 %vm340_vm1, %v2708_v59  ;;  %v3572_v42 = vpop.f32.mrf.mxu1 }
 0x13d   : > { %v5081_v34 = vadd.f32 %v3530_v55, %v4987_v24 }
 0x13e   : > { %v5083_v5 = vpop.f32.mrf.mxu0  ;;  %v1343_v7 = vpop.f32.mrf.mxu1 }
 0x13f   : > { %5530 = vst [vmem:[#allocation12_spill] sm:$0xff] %v5081_v34 }
 0x140   : > { %v5085_v54 = vpop.f32.mrf.mxu0  ;;  %v3573_v49 = vpop.f32.mrf.mxu1 }
 0x141   : > { %5531 = vst [vmem:[#allocation13_spill] sm:$0xff] %v5085_v54 }
 0x142   : > { %v5087_v11 = vpop.f32.mrf.mxu0  ;;  %v1346_v57 = vpop.f32.mrf.mxu1 }
 0x143   : > { %5532 = vst [vmem:[#allocation14_spill] sm:$0xff] %v5087_v11 }
 0x144   : > { %v3554_v19 = vpop.f32.mrf.mxu0  ;;  %v5089_v46 = vpop.f32.mrf.mxu1 }
 0x146   : > { %v1213_v4 = vpop.f32.mrf.mxu0  ;;  %v5091_v2 = vpop.f32.mrf.mxu1 }
 0x148   : > { %v3555_v36 = vpop.f32.mrf.mxu0  ;;  %v5093_v30 = vpop.f32.mrf.mxu1 }
 0x14a   : > { %v1216_v24 = vpop.f32.mrf.mxu0  ;;  %v5095_v47 = vpop.f32.mrf.mxu1 }
 0x14c   : > { %v3558_v13 = vpop.f32.mrf.mxu0  ;;  %v5097_v32 = vpop.f32.mrf.mxu1 }
 0x14d   : > { %5533 = vst [vmem:[#allocation15_spill] sm:$0xff] %v5097_v32 }
 0x14e   : > { %v1229_v52 = vpop.f32.mrf.mxu0  ;;  %v5099_v35 = vpop.f32.mrf.mxu1 }
 0x14f   : > { %5534 = vst [vmem:[#allocation16_spill] sm:$0xff] %v5099_v35 }
 0x150   : > { %v3559_v50 = vpop.f32.mrf.mxu0  ;;  %v5101_v25 = vpop.f32.mrf.mxu1 }
 0x151   : > { %5535 = vst [vmem:[#allocation17_spill] sm:$0xff] %v5101_v25  ;;  %v1029_v25 = vadd.f32 %v5015_v22, %v4916_v40  ;;  %v1158_v40 = vadd.f32 %v4974_v63, %v5003_v43  ;;  %v1036_v43 = vadd.f32 %v5047_v10, %v4948_v51  ;;  %v1037_v51 = vadd.f32 %v5067_v48, %v4967_v27 }
 0x152   : > { %v1232_v59 = vpop.f32.mrf.mxu0  ;;  %v5103_v55 = vpop.f32.mrf.mxu1 }
 0x153   : > { %5536 = vst [vmem:[#allocation18_spill] sm:$0xff] %v5103_v55 }
 0x154   : > { %v5105_v3 = vpop.f32.mrf.mxu0  ;;  %v5107_v26 = vpop.f32.mrf.mxu1 }
 0x155   : > { %5537 = vst [vmem:[#allocation19_spill] sm:$0xff] %v5107_v26 }
 0x156   : > { %v5109_v62 = vpop.f32.mrf.mxu0  ;;  %v5111_v34 = vpop.f32.mrf.mxu1 }
 0x157   : > { %5538 = vst [vmem:[#allocation20_spill] sm:$0xff] %v5111_v34  ;;  %v1032_v34 = vadd.f32 %v5021_v15, %v4919_v17  ;;  %v1033_v17 = vadd.f32 %v5040_v45, %v4945_v56  ;;  %v1278_v15 = vadd.f32 %v3554_v19, %v1158_v40 }
 0x158   : > { %v5113_v33 = vpop.f32.mrf.mxu0  ;;  %v5115_v32 = vpop.f32.mrf.mxu1 }
 0x159   : > { %5539 = vst [vmem:[#allocation21_spill] sm:$0xff] %v5115_v32  ;;  %v1156_v32 = vadd.f32 %v4985_v21, %v1029_v25  ;;  %v1159_v38 = vadd.f32 %v4990_v31, %v1032_v34  ;;  %v1157_v21 = vadd.f32 %v4995_v16, %v1030_v8  ;;  %v1160_v45 = vadd.f32 %v5019_v41, %v1033_v17 }
 0x15a   : > { %v5117_v11 = vpop.f32.mrf.mxu0  ;;  %v5121_v29 = vpop.f32.mrf.mxu1  ;;  %v1408_v31 = vadd.f32 %v3572_v42, %v1278_v15  ;;  %v1162_v8 = vadd.f32 %v5005_v23, %v5032_v12  ;;  %v1163_v41 = vadd.f32 %v5023_v9, %v1036_v43 }
 0x15b   : > { %5540 = vst [vmem:[#allocation22_spill] sm:$0xff] %v5117_v11  ;;  %5541 = vst [vmem:[#allocation23_spill] sm:$0xff] %v5121_v29  ;;  %v1276_v22 = vadd.f32 %v1213_v4, %v1156_v32  ;;  %v1034_v4 = vadd.f32 %v5051_v37, %v4959_v58  ;;  %v5170_v37 = vld [vmem:[%s5494_s2] ss:$0 sm:$0xff] }
 0x15c   : > { %v5123_v55 = vpop.f32.mrf.mxu0  ;;  %v5125_v54 = vpop.f32.mrf.mxu1  ;;  %v1282_v58 = vadd.f32 %v3558_v13, %v1162_v8 }
 0x15d   : > { %5542 = vst [vmem:[#allocation24_spill] sm:$0xff] %v5123_v55  ;;  %5543 = vst [vmem:[#allocation25_spill] sm:$0xff] %v5125_v54  ;;  %v1406_v55 = vadd.f32 %v1343_v7, %v1276_v22  ;;  %v1280_v7 = vadd.f32 %v1229_v52, %v1160_v45  ;;  %v1161_v10 = vadd.f32 %v5027_v61, %v1034_v4 }
 0x15e   : > { %v5127_v26 = vpop.f32.mrf.mxu0  ;;  %v5134_v35 = vpop.f32.mrf.mxu1  ;;  %v1164_v22 = vadd.f32 %v5045_v0, %v1037_v51  ;;  %v1041_v45 = vadd.f32 %v5083_v5, %v4992_v6  ;;  %v5547_v51 = vld [vmem:[#allocation16_spill] sm:$0xff] }
 0x15f   : > { %5544 = vst [vmem:[#allocation26_spill] sm:$0xff] %v5134_v35  ;;  %v1279_v35 = vadd.f32 %v3555_v36, %v1159_v38  ;;  %v1281_v52 = vadd.f32 %v1232_v59, %v1161_v10  ;;  %v1410_v61 = vadd.f32 %v5091_v2, %v1280_v7  ;;  %v1166_v2 = vadd.f32 %v5034_v18, %v5058_v1  ;;  %v5549_v10 = vld [vmem:[#allocation13_spill] sm:$0xff] }
 0x160   : > { %v5136_v11 = vpop.f32.mrf.mxu0  ;;  %v5140_v29 = vpop.f32.mrf.mxu1 }
 0x161   : > { %5545 = vst [vmem:[#allocation27_spill] sm:$0xff] %v5136_v11  ;;  %v1277_v11 = vadd.f32 %v1216_v24, %v1157_v21  ;;  %v1409_v24 = vadd.f32 %v3573_v49, %v1279_v35  ;;  %v1040_v35 = vadd.f32 %v5071_v53, %v4970_v14  ;;  %v1284_v14 = vadd.f32 %v5109_v62, %v1164_v22 }
 0x162   : > { %v5142_v54 = vpop.f32.mrf.mxu0  ;;  %v5148_v28 = vpop.f32.mrf.mxu1  ;;  %v1411_v0 = vadd.f32 %v5095_v47, %v1281_v52  ;;  %v5553_v52 = vld [vmem:[#allocation15_spill] sm:$0xff] }
 0x163   : > { %v1407_v32 = vadd.f32 %v1346_v57, %v1277_v11  ;;  %v1283_v57 = vadd.f32 %v3559_v50, %v1163_v41  ;;  %v1412_v50 = vadd.f32 %v5089_v46, %v1282_v58  ;;  %v1167_v18 = vadd.f32 %v5049_v60, %v1040_v35  ;;  %v5548_v41 = vld [vmem:[#allocation6_spill] sm:$0xff] }
 0x164   : > { %v3590_v25 = vpop.f32.mrf.mxu0  ;;  %v5150_v63 = vpop.f32.mrf.mxu1  ;;  %v1414_v6 = vadd.f32 %v5547_v51, %v1284_v14  ;;  %v5557_v14 = vld [vmem:[#allocation18_spill] sm:$0xff] }
 0x165   : > { %v1535_v36 = vadd.f32 %v3590_v25, %v1408_v31  ;;  %v1413_v53 = vadd.f32 %v5093_v30, %v1283_v57  ;;  %v1286_v31 = vadd.f32 %v5105_v3, %v1166_v2  ;;  %v1287_v7 = vadd.f32 %v5113_v33, %v1167_v18  ;;  %v5552_v33 = vld [vmem:[#allocation9_spill] sm:$0xff] }
 0x166   : > { %v1470_v56 = vpop.f32.mrf.mxu0  ;;  %v5157_v16 = vpop.f32.mrf.mxu1  ;;  %v1168_v57 = vadd.f32 %v5552_v33, %v1041_v45 }
 0x167   : > { %v1533_v34 = vadd.f32 %v1470_v56, %v1406_v55  ;;  %v1557_v48 = vadd.f32 %v5170_v37, %v1535_v36  ;;  %v1038_v55 = vadd.f32 %v5075_v20, %v4980_v44  ;;  %v5546_v36 = vld [vmem:[#allocation22_spill] sm:$0xff] }
 0x168   : > { %v3591_v19 = vpop.f32.mrf.mxu0  ;;  %v5161_v40 = vpop.f32.mrf.mxu1 }
 0x169   : > { %v1555_v12 = vadd.f32 %v5170_v37, %v1533_v34  ;;  %v1536_v42 = vadd.f32 %v3591_v19, %v1409_v24  ;;  %v1573_v20 = vmax.f32 %v1557_v48, 0.0  ;;  %v1165_v1 = vadd.f32 %v5053_v39, %v1038_v55 }
 0x16a   : > { %v1473_v23 = vpop.f32.mrf.mxu0  ;;  %v5173_v11 = vpop.f32.mrf.mxu1 }
 0x16b   : > { %v1534_v49 = vadd.f32 %v1473_v23, %v1407_v32  ;;  %v1571_v17 = vmax.f32 %v1555_v12, 0.0  ;;  %v1558_v15 = vadd.f32 %v5170_v37, %v1536_v42  ;;  %v1285_v24 = vadd.f32 %v5546_v36, %v1165_v1  ;;  %v5550_v12 = vld [vmem:[#allocation7_spill] sm:$0xff]  ;;  %v5551_v42 = vld [vmem:[#allocation14_spill] sm:$0xff] }
 0x16c   : > { %v3594_v27 = vpop.f32.mrf.mxu0  ;;  %v5178_v13 = vpop.f32.mrf.mxu1  ;;  %v1044_v23 = vadd.f32 %v5549_v10, %v5548_v41  ;;  %v5560_v1 = vld [vmem:[#allocation11_spill] sm:$0xff] }
 0x16d   : > { %v1556_v9 = vadd.f32 %v5170_v37, %v1534_v49  ;;  %v1539_v43 = vadd.f32 %v3594_v27, %v1412_v50  ;;  %v1574_v30 = vmax.f32 %v1558_v15, 0.0  ;;  %v1042_v49 = vadd.f32 %v5551_v42, %v5550_v12  ;;  %v5554_v50 = vld [vmem:[#allocation12_spill] sm:$0xff]  ;;  %v5561_v36 = vld [vmem:[#allocation27_spill] sm:$0xff] }
 0x16e   : > { %v1486_v59 = vpop.f32.mrf.mxu0  ;;  %v5187_v25 = vpop.f32.mrf.mxu1  ;;  %v1416_v27 = vadd.f32 %v5553_v52, %v1286_v31  ;;  %v1288_v15 = vadd.f32 %v5127_v26, %v1168_v57  ;;  %v5559_v31 = vld [vmem:[#allocation10_spill] sm:$0xff] }
 0x16f   : > { %v1572_v38 = vmax.f32 %v1556_v9, 0.0  ;;  %v1537_v21 = vadd.f32 %v1486_v59, %v1410_v61  ;;  %v1561_v3 = vadd.f32 %v5170_v37, %v1539_v43  ;;  %v5555_v59 = vld [vmem:[#allocation8_spill] sm:$0xff]  ;;  %v1171_v18 = vadd.f32 %v5559_v31, %v1044_v23  ;;  %v5563_v23 = vld [vmem:[#allocation19_spill] sm:$0xff]  ;;  %v5566_v31 = vld [vmem:[#allocation25_spill] sm:$0xff] }
 0x170   : > { %v3595_v44 = vpop.f32.mrf.mxu0  ;;  %v5195_v56 = vpop.f32.mrf.mxu1 }
 0x171   : > { %v1588_v46 = vadd.f32 %v1572_v38, %v1571_v17  ;;  %v1559_v4 = vadd.f32 %v5170_v37, %v1537_v21  ;;  %v1540_v47 = vadd.f32 %v3595_v44, %v1413_v53  ;;  %v1170_v17 = vadd.f32 %v5555_v59, %v5554_v50  ;;  %v5556_v38 = vld [vmem:[#allocation17_spill] sm:$0xff]  ;;  %v5565_v59 = vld [vmem:[#allocation23_spill] sm:$0xff] }
 0x172   : > { %v1489_v62 = vpop.f32.mrf.mxu0  ;;  %v5202_v19 = vpop.f32.mrf.mxu1  ;;  %v1417_v21 = vadd.f32 %v5556_v38, %v1287_v7  ;;  %v1415_v53 = vadd.f32 %v5557_v14, %v1285_v24  ;;  %v1577_v44 = vmax.f32 %v1561_v3, 0.0  ;;  %v1291_v24 = vadd.f32 %v5561_v36, %v1171_v18 }
 0x173   : > { %v1589_v34 = vadd.f32 %v1588_v46, %v1573_v20  ;;  %v1538_v8 = vadd.f32 %v1489_v62, %v1411_v0  ;;  %v1575_v5 = vmax.f32 %v1559_v4, 0.0  ;;  %v1562_v61 = vadd.f32 %v5170_v37, %v1540_v47  ;;  %v5558_v4 = vld [vmem:[#allocation24_spill] sm:$0xff] }
 0x174   : > { %v3598_v32 = vpop.f32.mrf.mxu0  ;;  %v5209_v58 = vpop.f32.mrf.mxu1  ;;  %v1290_v45 = vadd.f32 %v5558_v4, %v1170_v17  ;;  %v1169_v62 = vadd.f32 %v5560_v1, %v1042_v49 }
 0x175   : > { %v1590_v60 = vadd.f32 %v1589_v34, %v1574_v30  ;;  %v1560_v39 = vadd.f32 %v5170_v37, %v1538_v8  ;;  %v1543_v20 = vadd.f32 %v3598_v32, %v1416_v27  ;;  %v1578_v26 = vmax.f32 %v1562_v61, 0.0 }
 0x176   : > { %v1502_v48 = vpop.f32.mrf.mxu0  ;;  %v5218_v22 = vpop.f32.mrf.mxu1  ;;  %v1289_v32 = vadd.f32 %v5142_v54, %v1169_v62  ;;  %v1420_v12 = vadd.f32 %v5563_v23, %v1290_v45 }
 0x177   : > { %v1591_v9 = vadd.f32 %v1590_v60, %v1575_v5  ;;  %v1576_v35 = vmax.f32 %v1560_v39, 0.0  ;;  %v1541_v55 = vadd.f32 %v1502_v48, %v1414_v6  ;;  %v5562_v6 = vld [vmem:[#allocation20_spill] sm:$0xff]  ;;  %v1565_v5 = vadd.f32 %v5170_v37, %v1543_v20  ;;  %v5564_v48 = vld [vmem:[#allocation21_spill] sm:$0xff] }
 0x178   : > { %v3599_v2 = vpop.f32.mrf.mxu0  ;;  %v5226_v43 = vpop.f32.mrf.mxu1  ;;  %v1418_v3 = vadd.f32 %v5562_v6, %v1288_v15  ;;  %v1419_v17 = vadd.f32 %v5565_v59, %v1289_v32 }
 0x179   : > { %v1592_v0 = vadd.f32 %v1591_v9, %v1576_v35  ;;  %v1563_v46 = vadd.f32 %v5170_v37, %v1541_v55  ;;  %v1544_v47 = vadd.f32 %v3599_v2, %v1417_v21  ;;  %v1421_v9 = vadd.f32 %v5564_v48, %v1291_v24 }
 0x17a   : > { %v1505_v30 = vpop.f32.mrf.mxu0  ;;  %v5231_v7 = vpop.f32.mrf.mxu1  ;;  %v1581_v35 = vmax.f32 %v1565_v5, 0.0 }
 0x17b   : > { %v1593_v34 = vadd.f32 %v1592_v0, %v1577_v44  ;;  %v1542_v8 = vadd.f32 %v1505_v30, %v1415_v53  ;;  %v1579_v60 = vmax.f32 %v1563_v46, 0.0  ;;  %v1566_v33 = vadd.f32 %v5170_v37, %v1544_v47  ;;  %v5567_v47 = vld [vmem:[#allocation26_spill] sm:$0xff] }
 0x17c   : > { %v3602_v51 = vpop.f32.mrf.mxu0  ;;  %v3644_v10 = vpop.f32.mrf.mxu1 }
 0x17d   : > { %v1594_v39 = vadd.f32 %v1593_v34, %v1578_v26  ;;  %v1564_v41 = vadd.f32 %v5170_v37, %v1542_v8  ;;  %v1547_v54 = vadd.f32 %v3602_v51, %v1420_v12  ;;  %v1582_v2 = vmax.f32 %v1566_v33, 0.0 }
 0x17e   : > { %v1518_v42 = vpop.f32.mrf.mxu0  ;;  %v2134_v27 = vpop.f32.mrf.mxu1 }
 0x17f   : > { %v1595_v49 = vadd.f32 %v1594_v39, %v1579_v60  ;;  %v1580_v57 = vmax.f32 %v1564_v41, 0.0  ;;  %v1545_v52 = vadd.f32 %v1518_v42, %v1418_v3  ;;  %v1569_v0 = vadd.f32 %v5170_v37, %v1547_v54 }
 0x180   : > { %v3603_v61 = vpop.f32.mrf.mxu0  ;;  %v3645_v15 = vpop.f32.mrf.mxu1 }
 0x181   : > { %v1596_v55 = vadd.f32 %v1595_v49, %v1580_v57  ;;  %v1567_v50 = vadd.f32 %v5170_v37, %v1545_v52  ;;  %v1548_v38 = vadd.f32 %v3603_v61, %v1421_v9  ;;  %v1585_v51 = vmax.f32 %v1569_v0, 0.0 }
 0x182   : > { %v1521_v21 = vpop.f32.mrf.mxu0  ;;  %v2137_v44 = vpop.f32.mrf.mxu1 }
 0x183   : > { %v1597_v14 = vadd.f32 %v1596_v55, %v1581_v35  ;;  %v1546_v53 = vadd.f32 %v1521_v21, %v1419_v17  ;;  %v1583_v46 = vmax.f32 %v1567_v50, 0.0  ;;  %v1570_v62 = vadd.f32 %v5170_v37, %v1548_v38 }
 0x184   : > { %v3626_v20 = vpop.f32.mrf.mxu0  ;;  %v3648_v1 = vpop.f32.mrf.mxu1 }
 0x185   : > { %v1598_v4 = vadd.f32 %v1597_v14, %v1582_v2  ;;  %v1568_v45 = vadd.f32 %v5170_v37, %v1546_v53  ;;  %v1958_v18 = vadd.f32 %v3626_v20, %v5566_v31  ;;  %v1586_v41 = vmax.f32 %v1570_v62, 0.0 }
 0x186   : > { %v1949_v30 = vpop.f32.mrf.mxu0  ;;  %v2150_v36 = vpop.f32.mrf.mxu1 }
 0x187   : > { %v1599_v26 = vadd.f32 %v1598_v4, %v1583_v46  ;;  %v1584_v34 = vmax.f32 %v1568_v45, 0.0  ;;  %v1950_v8 = vadd.f32 %v1949_v30, %v5567_v47  ;;  %v5248_v24 = vadd.f32 %v3644_v10, %v1958_v18  ;;  %v1587_v45 = vld [vmem:[#allocation2] sm:$0x1] }
 0x188   : > { %v3627_v32 = vpop.f32.mrf.mxu0  ;;  %v3649_v5 = vpop.f32.mrf.mxu1 }
 0x189   : > { %v1600_v6 = vadd.f32 %v1599_v26, %v1584_v34  ;;  %v1961_v3 = vadd.f32 %v3627_v32, %v5140_v29  ;;  %v5251_v60 = vadd.f32 %v2134_v27, %v1950_v8 }
 0x18a   : > { %v1952_v39 = vpop.f32.mrf.mxu0  ;;  %v2153_v42 = vpop.f32.mrf.mxu1 }
 0x18b   : > { %v1601_v23 = vadd.f32 %v1600_v6, %v1585_v51  ;;  %v1953_v12 = vadd.f32 %v1952_v39, %v5148_v28  ;;  %v5254_v49 = vadd.f32 %v3645_v15, %v1961_v3 }
 0x18c   : > { %v3630_v33 = vpop.f32.mrf.mxu0  ;;  %v3652_v52 = vpop.f32.mrf.mxu1 }
 0x18d   : > { %v1602_v57 = vadd.f32 %v1601_v23, %v1586_v41  ;;  %v1974_v10 = vadd.f32 %v3630_v33, %v5150_v63  ;;  %v5257_v54 = vadd.f32 %v2137_v44, %v1953_v12 }
 0x18e   : > { %v1965_v48 = vpop.f32.mrf.mxu0  ;;  %v2166_v9 = vpop.f32.mrf.mxu1 }
 0x18f   : > { %v1603_v29 = vrot.slane %v1602_v57, 4  ;;  %v1966_v27 = vadd.f32 %v1965_v48, %v5157_v16  ;;  %v2203_v61 = vadd.f32 %v3648_v1, %v1974_v10 }
 0x190   : > { %v3631_v35 = vpop.f32.mrf.mxu0  ;;  %v3653_v50 = vpop.f32.mrf.mxu1 }
 0x191   : > { %v1604_v55 = vadd.f32 %v1603_v29, %v1602_v57  ;;  %v1977_v28 = vadd.f32 %v3631_v35, %v5161_v40  ;;  %v5261_v59 = vadd.f32 %v2150_v36, %v1966_v27 }
 0x192   : > { %v1968_v17 = vpop.f32.mrf.mxu0  ;;  %v2169_v38 = vpop.f32.mrf.mxu1 }
 0x193   : > { %v1605_v15 = vrot.slane %v1604_v55, 2  ;;  %v1969_v63 = vadd.f32 %v1968_v17, %v5173_v11  ;;  %v5264_v21 = vadd.f32 %v3649_v5, %v1977_v28 }
 0x194   : > { %v3634_v2 = vpop.f32.mrf.mxu0  ;;  %v3656_v53 = vpop.f32.mrf.mxu1 }
 0x195   : > { %v1606_v14 = vadd.f32 %v1605_v15, %v1604_v55  ;;  %v1990_v16 = vadd.f32 %v3634_v2, %v5178_v13  ;;  %v5267_v44 = vadd.f32 %v2153_v42, %v1969_v63 }
 0x196   : > { %v1981_v0 = vpop.f32.mrf.mxu0  ;;  %v2182_v46 = vpop.f32.mrf.mxu1 }
 0x197   : > { %v1607_v20 = vrot.slane %v1606_v14, 1  ;;  %v1982_v40 = vadd.f32 %v1981_v0, %v5187_v25  ;;  %v2207_v4 = vadd.f32 %v3652_v52, %v1990_v16 }
 0x198   : > { %v3635_v31 = vpop.f32.mrf.mxu0  ;;  %v3657_v1 = vpop.f32.mrf.mxu1 }
 0x199   : > { %v1608_v18 = vadd.f32 %v1607_v20, %v1606_v14  ;;  %v1993_v11 = vadd.f32 %v3635_v31, %v5195_v56  ;;  %v5271_v62 = vadd.f32 %v2166_v9, %v1982_v40 }
 0x19a   : > { %v1984_v30 = vpop.f32.mrf.mxu0  ;;  %v2185_v34 = vpop.f32.mrf.mxu1 }
 0x19b   : > { %v1609_v26 = vadd.f32 %v1608_v18, %v1587_v45  ;;  %v1985_v13 = vadd.f32 %v1984_v30, %v5202_v19  ;;  %v5274_v47 = vadd.f32 %v3653_v50, %v1993_v11 }
 0x19c   : > { %v3638_v8 = vpop.f32.mrf.mxu0  ;;  %v3680_v36 = vpop.f32.mrf.mxu1 }
 0x19d   : > { %1610 = vst [vmem:[#allocation2] sm:$0x1] %v1609_v26  ;;  %v2006_v25 = vadd.f32 %v3638_v8, %v5209_v58  ;;  %v5277_v32 = vadd.f32 %v2169_v38, %v1985_v13 }
 0x19e   : > { %v1997_v51 = vpop.f32.mrf.mxu0  ;;  %v5280_v6 = vpop.f32.mrf.mxu1 }
 0x19f   : > { %v1998_v56 = vadd.f32 %v1997_v51, %v5218_v22  ;;  %v2211_v3 = vadd.f32 %v3656_v53, %v2006_v25 }
 0x1a0   : > { %v3639_v5 = vpop.f32.mrf.mxu0  ;;  %v5283_v19 = vpop.f32.mrf.mxu1 }
 0x1a1   : > { %v2009_v39 = vadd.f32 %v3639_v5, %v5226_v43  ;;  %v5285_v41 = vadd.f32 %v2182_v46, %v1998_v56 }
 0x1a2   : > { %v2000_v23 = vpop.f32.mrf.mxu0  ;;  %v5288_v58 = vpop.f32.mrf.mxu1 }
 0x1a3   : > { %v2001_v12 = vadd.f32 %v2000_v23, %v5231_v7  ;;  %v5290_v42 = vadd.f32 %v3657_v1, %v2009_v39 }
 0x1a4   : > { %v3662_v33 = vpop.f32.mrf.mxu0  ;;  %v3684_v57 = vpop.f32.mrf.mxu1 }
 0x1a5   : > { %v2316_v22 = vadd.f32 %v3662_v33, %v5248_v24  ;;  %v5293_v10 = vadd.f32 %v2185_v34, %v2001_v12 }
 0x1a6   : > { %v2251_v52 = vpop.f32.mrf.mxu0  ;;  %v5295_v48 = vpop.f32.mrf.mxu1 }
 0x1a7   : > { %5568 = vst [vmem:[#allocation22_spill] sm:$0xff] %v5293_v10  ;;  %v5297_v43 = vadd.f32 %v3680_v36, %v2316_v22 }
 0x1a8   : > { %v3663_v29 = vpop.f32.mrf.mxu0  ;;  %v5299_v27 = vpop.f32.mrf.mxu1 }
 0x1aa   : > { %v2254_v9 = vpop.f32.mrf.mxu0  ;;  %v5301_v7 = vpop.f32.mrf.mxu1 }
 0x1ac   : > { %v3666_v35 = vpop.f32.mrf.mxu0  ;;  %v3688_v28 = vpop.f32.mrf.mxu1 }
 0x1ad   : > { %v2320_v55 = vadd.f32 %v3666_v35, %v2203_v61 }
 0x1ae   : > { %v5303_v50 = vpop.f32.mrf.mxu0  ;;  %v5305_v24 = vpop.f32.mrf.mxu1 }
 0x1af   : > { %v5307_v17 = vadd.f32 %v3684_v57, %v2320_v55 }
 0x1b0   : > { %v5309_v15 = vpop.f32.mrf.mxu0  ;;  %v5311_v63 = vpop.f32.mrf.mxu1 }
 0x1b2   : > { %v5313_v38 = vpop.f32.mrf.mxu0  ;;  %v5315_v2 = vpop.f32.mrf.mxu1 }
 0x1b4   : > { %v3670_v14 = vpop.f32.mrf.mxu0  ;;  %v3692_v53 = vpop.f32.mrf.mxu1 }
 0x1b5   : > { %v2324_v16 = vadd.f32 %v3670_v14, %v2207_v4 }
 0x1b6   : > { %v5317_v0 = vpop.f32.mrf.mxu0  ;;  %v5319_v61 = vpop.f32.mrf.mxu1 }
 0x1b7   : > { %5569 = vst [vmem:[#allocation16_spill] sm:$0xff] %v5319_v61  ;;  %v5321_v20 = vadd.f32 %v3688_v28, %v2324_v16  ;;  %v2315_v61 = vadd.f32 %v2254_v9, %v5257_v54 }
 0x1b8   : > { %v5323_v40 = vpop.f32.mrf.mxu0  ;;  %v5325_v46 = vpop.f32.mrf.mxu1 }
 0x1b9   : > { %5570 = vst [vmem:[#allocation6_spill] sm:$0xff] %v5325_v46 }
 0x1ba   : > { %v5327_v45 = vpop.f32.mrf.mxu0  ;;  %v5329_v31 = vpop.f32.mrf.mxu1 }
 0x1bb   : > { %5571 = vst [vmem:[#allocation13_spill] sm:$0xff] %v5329_v31 }
 0x1bc   : > { %v3674_v18 = vpop.f32.mrf.mxu0  ;;  %v3716_v1 = vpop.f32.mrf.mxu1 }
 0x1bd   : > { %v2328_v11 = vadd.f32 %v3674_v18, %v2211_v3 }
 0x1be   : > { %v5331_v30 = vpop.f32.mrf.mxu0  ;;  %v2619_v4 = vpop.f32.mrf.mxu1 }
 0x1bf   : > { %v5333_v26 = vadd.f32 %v3692_v53, %v2328_v11 }
 0x1c0   : > { %v5335_v13 = vpop.f32.mrf.mxu0  ;;  %v3717_v34 = vpop.f32.mrf.mxu1 }
 0x1c1   : > { %5572 = vst [vmem:[#allocation7_spill] sm:$0xff] %v5333_v26  ;;  %5573 = vst [vmem:[#allocation14_spill] sm:$0xff] %v5335_v13 }
 0x1c2   : > { %v5337_v8 = vpop.f32.mrf.mxu0  ;;  %v2622_v25 = vpop.f32.mrf.mxu1 }
 0x1c3   : > { %5574 = vst [vmem:[#allocation9_spill] sm:$0xff] %v5337_v8 }
 0x1c4   : > { %v3698_v36 = vpop.f32.mrf.mxu0  ;;  %v5339_v51 = vpop.f32.mrf.mxu1 }
 0x1c6   : > { %v2502_v56 = vpop.f32.mrf.mxu0  ;;  %v5341_v5 = vpop.f32.mrf.mxu1 }
 0x1c8   : > { %v3699_v39 = vpop.f32.mrf.mxu0  ;;  %v5343_v3 = vpop.f32.mrf.mxu1 }
 0x1ca   : > { %v2505_v23 = vpop.f32.mrf.mxu0  ;;  %v5345_v12 = vpop.f32.mrf.mxu1 }
 0x1cc   : > { %v3702_v33 = vpop.f32.mrf.mxu0  ;;  %v5347_v22 = vpop.f32.mrf.mxu1 }
 0x1cd   : > { %5575 = vst [vmem:[#allocation15_spill] sm:$0xff] %v5347_v22 }
 0x1ce   : > { %v2518_v57 = vpop.f32.mrf.mxu0  ;;  %v5349_v35 = vpop.f32.mrf.mxu1 }
 0x1cf   : > { %5576 = vst [vmem:[#allocation12_spill] sm:$0xff] %v5349_v35 }
 0x1d0   : > { %v3703_v55 = vpop.f32.mrf.mxu0  ;;  %v5351_v28 = vpop.f32.mrf.mxu1 }
 0x1d1   : > { %5577 = vst [vmem:[#allocation8_spill] sm:$0xff] %v5351_v28  ;;  %v2314_v28 = vadd.f32 %v2251_v52, %v5251_v60 }
 0x1d2   : > { %v5353_v14 = vpop.f32.mrf.mxu0  ;;  %v5355_v16 = vpop.f32.mrf.mxu1 }
 0x1d3   : > { %5578 = vst [vmem:[#allocation17_spill] sm:$0xff] %v5355_v16  ;;  %v2317_v16 = vadd.f32 %v3663_v29, %v5254_v49  ;;  %v2318_v49 = vadd.f32 %v5303_v50, %v5261_v59  ;;  %v2319_v59 = vadd.f32 %v5313_v38, %v5267_v44 }
 0x1d4   : > { %v5357_v53 = vpop.f32.mrf.mxu0  ;;  %v5359_v18 = vpop.f32.mrf.mxu1 }
 0x1d5   : > { %5579 = vst [vmem:[#allocation18_spill] sm:$0xff] %v5359_v18  ;;  %v2444_v60 = vadd.f32 %v5283_v19, %v2317_v16  ;;  %v2445_v19 = vadd.f32 %v5295_v48, %v2318_v49 }
 0x1d6   : > { %v5361_v11 = vpop.f32.mrf.mxu0  ;;  %v5363_v31 = vpop.f32.mrf.mxu1 }
 0x1d7   : > { %5580 = vst [vmem:[#allocation24_spill] sm:$0xff] %v5363_v31  ;;  %v2441_v31 = vadd.f32 %v5280_v6, %v2314_v28  ;;  %v2568_v29 = vadd.f32 %v3699_v39, %v2444_v60  ;;  %v2569_v50 = vadd.f32 %v2518_v57, %v2445_v19 }
 0x1d8   : > { %v5365_v26 = vpop.f32.mrf.mxu0  ;;  %v5367_v46 = vpop.f32.mrf.mxu1 }
 0x1d9   : > { %5581 = vst [vmem:[#allocation10_spill] sm:$0xff] %v5365_v26  ;;  %5582 = vst [vmem:[#allocation11_spill] sm:$0xff] %v5367_v46  ;;  %v2567_v46 = vadd.f32 %v3698_v36, %v5297_v43  ;;  %v2321_v43 = vadd.f32 %v5309_v15, %v5264_v21  ;;  %v2685_v16 = vadd.f32 %v3717_v34, %v2568_v29 }
 0x1da   : > { %v5369_v22 = vpop.f32.mrf.mxu0  ;;  %v5372_v8 = vpop.f32.mrf.mxu1  ;;  %v2571_v21 = vadd.f32 %v3702_v33, %v5307_v17  ;;  %v2325_v34 = vadd.f32 %v5323_v40, %v5274_v47 }
 0x1db   : > { %5583 = vst [vmem:[#allocation27_spill] sm:$0xff] %v5369_v22  ;;  %5584 = vst [vmem:[#allocation20_spill] sm:$0xff] %v5372_v8  ;;  %v2565_v22 = vadd.f32 %v2502_v56, %v2441_v31  ;;  %v2684_v28 = vadd.f32 %v3716_v1, %v2567_v46  ;;  %v2448_v48 = vadd.f32 %v5299_v27, %v2321_v43 }
 0x1dc   : > { %v5374_v10 = vpop.f32.mrf.mxu0  ;;  %v3752_v35 = vpop.f32.mrf.mxu1  ;;  %v2323_v27 = vadd.f32 %v5327_v45, %v5277_v32  ;;  %v2688_v40 = vadd.f32 %v5339_v51, %v2571_v21 }
 0x1dd   : > { %5585 = vst [vmem:[#allocation19_spill] sm:$0xff] %v5374_v10  ;;  %v2442_v10 = vadd.f32 %v5288_v58, %v2315_v61  ;;  %v2572_v38 = vadd.f32 %v3703_v55, %v2448_v48 }
 0x1de   : > { %v5377_v18 = vpop.f32.mrf.mxu0  ;;  %v2870_v26 = vpop.f32.mrf.mxu1 }
 0x1df   : > { %5586 = vst [vmem:[#allocation21_spill] sm:$0xff] %v5377_v18  ;;  %v2566_v6 = vadd.f32 %v2505_v23, %v2442_v10  ;;  %v2682_v18 = vadd.f32 %v2619_v4, %v2565_v22  ;;  %v2322_v4 = vadd.f32 %v5317_v0, %v5271_v62  ;;  %v2686_v62 = vadd.f32 %v5341_v5, %v2569_v50 }
 0x1e0   : > { %v5381_v13 = vpop.f32.mrf.mxu0  ;;  %v3753_v52 = vpop.f32.mrf.mxu1 }
 0x1e1   : > { %5587 = vst [vmem:[#allocation23_spill] sm:$0xff] %v5381_v13  ;;  %v2683_v46 = vadd.f32 %v2622_v25, %v2566_v6  ;;  %v2449_v0 = vadd.f32 %v5305_v24, %v2322_v4  ;;  %v2450_v6 = vadd.f32 %v5315_v2, %v2323_v27  ;;  %v5594_v4 = vld [vmem:[#allocation22_spill] sm:$0xff]  ;;  %v5598_v27 = vld [vmem:[#allocation8_spill] sm:$0xff] }
 0x1e2   : > { %v5385_v8 = vpop.f32.mrf.mxu0  ;;  %v2873_v54 = vpop.f32.mrf.mxu1  ;;  %v5592_v2 = vld [vmem:[#allocation27_spill] sm:$0xff] }
 0x1e3   : > { %5588 = vst [vmem:[#allocation25_spill] sm:$0xff] %v5385_v8  ;;  %v2573_v32 = vadd.f32 %v5361_v11, %v2449_v0  ;;  %v5589_v11 = vld [vmem:[#allocation14_spill] sm:$0xff]  ;;  %v2574_v50 = vadd.f32 %v5592_v2, %v2450_v6 }
 0x1e4   : > { %v3734_v9 = vpop.f32.mrf.mxu0  ;;  %v3756_v13 = vpop.f32.mrf.mxu1  ;;  %v2329_v43 = vadd.f32 %v5589_v11, %v5290_v42  ;;  %v5595_v42 = vld [vmem:[#allocation9_spill] sm:$0xff] }
 0x1e5   : > { %v2811_v36 = vadd.f32 %v3734_v9, %v2684_v28  ;;  %v2575_v9 = vadd.f32 %v5357_v53, %v5321_v20  ;;  %v2327_v21 = vadd.f32 %v5595_v42, %v5594_v4 }
 0x1e6   : > { %v2746_v31 = vpop.f32.mrf.mxu0  ;;  %v2886_v8 = vpop.f32.mrf.mxu1 }
 0x1e7   : > { %v2809_v56 = vadd.f32 %v2746_v31, %v2682_v18  ;;  %v2935_v39 = vadd.f32 %v3752_v35, %v2811_v36  ;;  %v5590_v36 = vld [vmem:[#allocation10_spill] sm:$0xff] }
 0x1e8   : > { %v3735_v58 = vpop.f32.mrf.mxu0  ;;  %v3757_v1 = vpop.f32.mrf.mxu1 }
 0x1e9   : > { %v2933_v61 = vadd.f32 %v2870_v26, %v2809_v56  ;;  %v2812_v10 = vadd.f32 %v3735_v58, %v2685_v16  ;;  %v2446_v26 = vadd.f32 %v5301_v7, %v2319_v59  ;;  %v2452_v7 = vadd.f32 %v5311_v63, %v2325_v34  ;;  %v5596_v34 = vld [vmem:[#allocation15_spill] sm:$0xff] }
 0x1ea   : > { %v2749_v15 = vpop.f32.mrf.mxu0  ;;  %v2889_v44 = vpop.f32.mrf.mxu1  ;;  %v2951_v35 = vadd.f32 %v5170_v37, %v2935_v39  ;;  %v2692_v39 = vadd.f32 %v5596_v34, %v2575_v9  ;;  %v5609_v34 = vld [vmem:[#allocation20_spill] sm:$0xff] }
 0x1eb   : > { %v2810_v23 = vadd.f32 %v2749_v15, %v2683_v46  ;;  %v2949_v25 = vadd.f32 %v5170_v37, %v2933_v61  ;;  %v2936_v57 = vadd.f32 %v3753_v52, %v2812_v10  ;;  %v2570_v47 = vadd.f32 %v5353_v14, %v2446_v26  ;;  %v5593_v10 = vld [vmem:[#allocation12_spill] sm:$0xff] }
 0x1ec   : > { %v3738_v22 = vpop.f32.mrf.mxu0  ;;  %v5404_v17 = vpop.f32.mrf.mxu1  ;;  %v2326_v52 = vadd.f32 %v5331_v30, %v5285_v41  ;;  %v2689_v14 = vadd.f32 %v5343_v3, %v2572_v38  ;;  %v2967_v3 = vmax.f32 %v2951_v35, 0.0  ;;  %v2576_v56 = vadd.f32 %v5590_v36, %v2452_v7  ;;  %v5597_v38 = vld [vmem:[#allocation6_spill] sm:$0xff]  ;;  %v5600_v35 = vld [vmem:[#allocation17_spill] sm:$0xff]  ;;  %v5606_v36 = vld [vmem:[#allocation24_spill] sm:$0xff] }
 0x1ed   : > { %v2934_v18 = vadd.f32 %v2873_v54, %v2810_v23  ;;  %v2815_v45 = vadd.f32 %v3738_v22, %v2688_v40  ;;  %v2965_v49 = vmax.f32 %v2949_v25, 0.0  ;;  %v2952_v51 = vadd.f32 %v5170_v37, %v2936_v57 }
 0x1ee   : > { %v2762_v33 = vpop.f32.mrf.mxu0  ;;  %v2902_v5 = vpop.f32.mrf.mxu1  ;;  %v2687_v41 = vadd.f32 %v5345_v12, %v2570_v47  ;;  %v2690_v46 = vadd.f32 %v5593_v10, %v2573_v32  ;;  %v2456_v26 = vadd.f32 %v5597_v38, %v2329_v43  ;;  %v2693_v47 = vadd.f32 %v5598_v27, %v2576_v56 }
 0x1ef   : > { %v2950_v55 = vadd.f32 %v5170_v37, %v2934_v18  ;;  %v2813_v60 = vadd.f32 %v2762_v33, %v2686_v62  ;;  %v2939_v59 = vadd.f32 %v3756_v13, %v2815_v45  ;;  %v2968_v61 = vmax.f32 %v2952_v51, 0.0  ;;  %v5599_v33 = vld [vmem:[#allocation21_spill] sm:$0xff]  ;;  %v5603_v51 = vld [vmem:[#allocation23_spill] sm:$0xff] }
 0x1f0   : > { %v3739_v24 = vpop.f32.mrf.mxu0  ;;  %v3761_v54 = vpop.f32.mrf.mxu1 }
 0x1f1   : > { %v2966_v29 = vmax.f32 %v2950_v55, 0.0  ;;  %v2937_v63 = vadd.f32 %v2886_v8, %v2813_v60  ;;  %v2816_v28 = vadd.f32 %v3739_v24, %v2689_v14  ;;  %v5591_v8 = vld [vmem:[#allocation16_spill] sm:$0xff]  ;;  %v2955_v57 = vadd.f32 %v5170_v37, %v2939_v59  ;;  %v5601_v60 = vld [vmem:[#allocation7_spill] sm:$0xff] }
 0x1f2   : > { %v2765_v30 = vpop.f32.mrf.mxu0  ;;  %v2453_v16 = vadd.f32 %v5591_v8, %v2326_v52  ;;  %v2905_v53 = vpop.f32.mrf.mxu1  ;;  %v2691_v55 = vadd.f32 %v5600_v35, %v2574_v50  ;;  %v5602_v52 = vld [vmem:[#allocation19_spill] sm:$0xff] }
 0x1f3   : > { %v2982_v31 = vadd.f32 %v2966_v29, %v2965_v49  ;;  %v2953_v19 = vadd.f32 %v5170_v37, %v2937_v63  ;;  %v2814_v58 = vadd.f32 %v2765_v30, %v2687_v41  ;;  %v2940_v48 = vadd.f32 %v3757_v1, %v2816_v28  ;;  %v5604_v63 = vld [vmem:[#allocation13_spill] sm:$0xff] }
 0x1f4   : > { %v3742_v20 = vpop.f32.mrf.mxu0  ;;  %v3764_v40 = vpop.f32.mrf.mxu1  ;;  %v2577_v1 = vadd.f32 %v5599_v33, %v2453_v16  ;;  %v2579_v32 = vadd.f32 %v5602_v52, %v5601_v60  ;;  %v2580_v29 = vadd.f32 %v5603_v51, %v2456_v26  ;;  %v2454_v9 = vadd.f32 %v5604_v63, %v2327_v21 }
 0x1f5   : > { %v2983_v12 = vadd.f32 %v2982_v31, %v2967_v3  ;;  %v2938_v15 = vadd.f32 %v2889_v44, %v2814_v58  ;;  %v2969_v13 = vmax.f32 %v2953_v19, 0.0  ;;  %v2819_v62 = vadd.f32 %v3742_v20, %v2692_v39  ;;  %v5605_v3 = vld [vmem:[#allocation25_spill] sm:$0xff]  ;;  %v5607_v58 = vld [vmem:[#allocation18_spill] sm:$0xff] }
 0x1f6   : > { %v2778_v23 = vpop.f32.mrf.mxu0  ;;  %v2956_v45 = vadd.f32 %v5170_v37, %v2940_v48  ;;  %v2971_v28 = vmax.f32 %v2955_v57, 0.0  ;;  %v2918_v11 = vpop.f32.mrf.mxu1  ;;  %v2578_v31 = vadd.f32 %v5605_v3, %v2454_v9  ;;  %v2694_v56 = vadd.f32 %v5606_v36, %v2577_v1 }
 0x1f7   : > { %v2984_v22 = vadd.f32 %v2983_v12, %v2968_v61  ;;  %v2817_v25 = vadd.f32 %v2778_v23, %v2690_v46  ;;  %v2954_v18 = vadd.f32 %v5170_v37, %v2938_v15  ;;  %v2943_v30 = vadd.f32 %v5404_v17, %v2819_v62  ;;  %v5608_v12 = vld [vmem:[#allocation11_spill] sm:$0xff] }
 0x1f8   : > { %v3743_v0 = vpop.f32.mrf.mxu0  ;;  %v2972_v8 = vmax.f32 %v2956_v45, 0.0  ;;  %v2696_v20 = vadd.f32 %v5607_v58, %v2579_v32  ;;  %v2697_v17 = vadd.f32 %v5608_v12, %v2580_v29  ;;  %v3765_v21 = vpop.f32.mrf.mxu1  ;;  %v2695_v39 = vadd.f32 %v5609_v34, %v2578_v31 }
 0x1f9   : > { %v2985_v44 = vadd.f32 %v2984_v22, %v2969_v13  ;;  %v2941_v7 = vadd.f32 %v2902_v5, %v2817_v25  ;;  %v2970_v14 = vmax.f32 %v2954_v18, 0.0  ;;  %v2820_v24 = vadd.f32 %v3743_v0, %v2693_v47 }
 0x1fa   : > { %v2781_v49 = vpop.f32.mrf.mxu0  ;;  %v2959_v10 = vadd.f32 %v5170_v37, %v2943_v30  ;;  %v2921_v62 = vpop.f32.mrf.mxu1 }
 0x1fb   : > { %v2818_v6 = vadd.f32 %v2781_v49, %v2691_v55  ;;  %v2986_v41 = vadd.f32 %v2985_v44, %v2970_v14  ;;  %v2957_v5 = vadd.f32 %v5170_v37, %v2941_v7  ;;  %v2944_v59 = vadd.f32 %v3761_v54, %v2820_v24 }
 0x1fc   : > { %v3746_v43 = vpop.f32.mrf.mxu0  ;;  %v2975_v22 = vmax.f32 %v2959_v10, 0.0 }
 0x1fd   : > { %v2942_v19 = vadd.f32 %v2905_v53, %v2818_v6  ;;  %v2987_v16 = vadd.f32 %v2986_v41, %v2971_v28  ;;  %v2973_v46 = vmax.f32 %v2957_v5, 0.0  ;;  %v2823_v42 = vadd.f32 %v3746_v43, %v2696_v20  ;;  %v2981_v28 = vld [vmem:[#allocation2] sm:$0x1] }
 0x1fe   : > { %v2794_v2 = vpop.f32.mrf.mxu0  ;;  %v2960_v23 = vadd.f32 %v5170_v37, %v2944_v59 }
 0x1ff   : > { %v2958_v50 = vadd.f32 %v5170_v37, %v2942_v19  ;;  %v2821_v61 = vadd.f32 %v2794_v2, %v2694_v56  ;;  %v2988_v4 = vadd.f32 %v2987_v16, %v2972_v8  ;;  %v2947_v57 = vadd.f32 %v3764_v40, %v2823_v42 }
 0x200   : > { %v3747_v53 = vpop.f32.mrf.mxu0  ;;  %v2976_v47 = vmax.f32 %v2960_v23, 0.0 }
 0x201   : > { %v2974_v48 = vmax.f32 %v2958_v50, 0.0  ;;  %v2945_v15 = vadd.f32 %v2918_v11, %v2821_v61  ;;  %v2989_v54 = vadd.f32 %v2988_v4, %v2973_v46  ;;  %v2824_v38 = vadd.f32 %v3747_v53, %v2697_v17 }
 0x202   : > { %v2797_v26 = vpop.f32.mrf.mxu0  ;;  %v2963_v44 = vadd.f32 %v5170_v37, %v2947_v57 }
 0x203   : > { %v2822_v13 = vadd.f32 %v2797_v26, %v2695_v39  ;;  %v2990_v25 = vadd.f32 %v2989_v54, %v2974_v48  ;;  %v2961_v18 = vadd.f32 %v5170_v37, %v2945_v15  ;;  %v2948_v33 = vadd.f32 %v3765_v21, %v2824_v38 }
 0x204   : > { %v2979_v40 = vmax.f32 %v2963_v44, 0.0 }
 0x205   : > { %v2946_v27 = vadd.f32 %v2921_v62, %v2822_v13  ;;  %v2991_v0 = vadd.f32 %v2990_v25, %v2975_v22  ;;  %v2977_v7 = vmax.f32 %v2961_v18, 0.0  ;;  %v2964_v52 = vadd.f32 %v5170_v37, %v2948_v33 }
 0x207   : > { %v2962_v1 = vadd.f32 %v5170_v37, %v2946_v27  ;;  %v2992_v35 = vadd.f32 %v2991_v0, %v2976_v47  ;;  %v2980_v45 = vmax.f32 %v2964_v52, 0.0 }
 0x209   : > { %v2978_v55 = vmax.f32 %v2962_v1, 0.0  ;;  %v2993_v60 = vadd.f32 %v2992_v35, %v2977_v7 }
 0x20b   : > { %v2994_v32 = vadd.f32 %v2993_v60, %v2978_v55 }
 0x20d   : > { %v2995_v14 = vadd.f32 %v2994_v32, %v2979_v40 }
 0x20f   : > { %v2996_v24 = vadd.f32 %v2995_v14, %v2980_v45 }
 0x211   : > { %v2997_v49 = vrot.slane %v2996_v24, 4 }
 0x213   : > { %v2998_v51 = vadd.f32 %v2997_v49, %v2996_v24 }
 0x215   : > { %v2999_v29 = vrot.slane %v2998_v51, 2 }
 0x217   : > { %v3000_v63 = vadd.f32 %v2999_v29, %v2998_v51 }
 0x219   : > { %v3001_v9 = vrot.slane %v3000_v63, 1 }
 0x21b   : > { %v3002_v6 = vadd.f32 %v3001_v9, %v3000_v63 }
 0x21d   : > { %v3003_v41 = vadd.f32 %v3002_v6, %v2981_v28 }
 0x21f   : > { %3004 = vst [vmem:[#allocation2] sm:$0x1] %v3003_v41 }
 0x226   : > { %v3005_v37 = vld [vmem:[#allocation2] sm:$0x1] }
 0x227   : > { %v3006_v30 = vmul.f32 0.00390625, %v3005_v37 }
 0x229   : > { %3007 = vst [vmem:[%s162_s6] sm:$0x1] %v3006_v30 }
 0x22a   : > { %3878 = shalt.err (!%p3875_p3)
}
 0x22b   : > { %s3879_s24 = scalar_lea.hbm %s3019_s10, 16  ;;  %s3883_s27 = scalar_lea.hbm %s5495_s3, 32 }
 0x22c   : > { %p3880_p4 = scmp.ne.s32.totalorder %s3019_s10, %s3879_s24  ;;  %p3884_p9 = scmp.lt.s32.totalorder %s3019_s10, %s5495_s3 }
 0x22d   : > { %p3885_p10 = scmp.lt.s32.totalorder %s3883_s27, %s3879_s24 }
 0x22e   : > { %p3881_p7 = pnand %p3880_p4, %p3987_p5 }
 0x22f   : > { %p3886_p11 = por %p3885_p10, %p3884_p9 }
 0x230   : > { %p3882_p8 = pneg %p3881_p7 }
 0x232   : > { %p3887_p12 = pnand %p3886_p11, %p3882_p8 }
 0x234   : > { %3890 = shalt.err (!%p3887_p12)
}
 0x235   : > { %3785 = dma.vmem_to_hbm [thread:$0]  (%p3987_p5), %s3022_s7, 16, %s3019_s10, %s3009_s11  }
 0x236 PF: > { %p3791_p13 = scmp.ge.s32.totalorder %s3925_s15, 2  ;;  %s3033_s30 = sand.u32 1, %s3913_s12  }
 0x237   : > { %s3034_s4 = scalar_lea.sflag [#allocation4], %s3033_s30 }
 0x238   : > { %p3788_p0 = pnand %p3791_p13, %p3991_p6 }
 0x23a   : > { %p3789_p1 = pneg %p3788_p0 }
 0x23c   : > { %3908 = dma.done.wait (%p3789_p1), %s3034_s4, 16  }
 0x23d   : > { %3910 = vsyncadd (%p3789_p1), %s3034_s4, 4294967280  ;;  %p13_p2 = scmp.ge.s32.totalorder %s3974_s18, 4   ;;  %s5610_s12 = smov %s3917_s13 }
 0x23e   : > { %s5611_s13 = smov %s3921_s14  ;;  %s5612_s14 = smov %s3985_s21 }
 0x23f   : > { %s5613_s15 = smov %s3974_s18  ;;  %15 = sbr.rel (!%p13_p2) target bundleno = 3 (0x3), region = 69 }
 0x244   :  { %3038 = vsyncpa [#allocation4], 1 }
 0x245   :  { %3040 = vsyncpa [#allocation4 + $0x1], 1 }

</bundles_post_ra>
